<compile_context>
chip_gen: v5e
topology: v5e:2x2
jax: 0.10.0
libtpu: 0.0.40
codegen_flags: <defaults>
</compile_context>

<pallas_src>
import jax
import jax.numpy as jnp
from jax import lax
from jax.experimental import pallas as pl
from jax.experimental.pallas import tpu as pltpu

NEG_SLOPE = 0.01  # nn.LeakyReLU() default negative_slope


def _fori(n, body):
    """Run body(i) for i in [0, n) inside the kernel (side effects via refs)."""
    def step(i, carry):
        body(i)
        return carry
    lax.fori_loop(0, n, step, 0)


# ------------------------------ fused kernel --------------------------------
def _encoder_kernel(x_ref, w0_ref, b0_ref, w1_ref, b1_ref, w2_ref, b2_ref,
                    w3_ref, b3_ref, o_ref, a0p, a1p, a2p):
    f32 = jnp.float32
    bf16 = jnp.bfloat16

    # Zero the 1-pixel halo of every padded scratch buffer.  Interiors are fully
    # rewritten below, so each grid step is self-contained (safe under megacore
    # partitioning of the parallel batch axis).
    for ref in (a0p, a1p, a2p):
        hp, wp, c = ref.shape
        zrow = jnp.zeros((wp, c), f32)
        zcol = jnp.zeros((hp, 1, c), f32)
        ref[0, :, :] = zrow
        ref[hp - 1, :, :] = zrow
        ref[:, 0:1, :] = zcol
        ref[:, wp - 1:wp, :] = zcol

    def leaky(v):
        return jnp.where(v > 0, v, NEG_SLOPE * v)

    # conv0: 1 -> 32, stride 1.  Cin=1, so 9 VPU broadcast MACs (no MXU).
    def conv0_row(h):
        acc = jnp.zeros((28, 32), f32)
        for t in range(9):
            dh, dw = divmod(t, 3)
            acc = acc + x_ref[0, h + dh, dw:dw + 28, :] * w0_ref[t:t + 1, :]
        a0p[h + 1, 1:29, :] = leaky(acc + b0_ref[...])

    # conv1: 32 -> 64, stride 2.  bf16 MXU dots, f32 accumulation.
    def conv1_row(ho):
        acc = jnp.zeros((14, 64), f32)
        for t in range(9):
            dh, dw = divmod(t, 3)
            xt = a0p[2 * ho + dh, pl.ds(dw, 14, stride=2), :].astype(bf16)
            acc = acc + jnp.dot(xt, w1_ref[t], preferred_element_type=f32)
        a1p[ho + 1, 1:15, :] = leaky(acc + b1_ref[...])

    # conv2: 64 -> 64, stride 2.
    def conv2_row(ho):
        acc = jnp.zeros((7, 64), f32)
        for t in range(9):
            dh, dw = divmod(t, 3)
            xt = a1p[2 * ho + dh, pl.ds(dw, 7, stride=2), :].astype(bf16)
            acc = acc + jnp.dot(xt, w2_ref[t], preferred_element_type=f32)
        a2p[ho + 1, 1:8, :] = leaky(acc + b2_ref[...])

    # conv3: 64 -> 64, stride 1.  Writes straight to the output block.
    def conv3_row(ho):
        acc = jnp.zeros((7, 64), f32)
        for t in range(9):
            dh, dw = divmod(t, 3)
            xt = a2p[ho + dh, dw:dw + 7, :].astype(bf16)
            acc = acc + jnp.dot(xt, w3_ref[t], preferred_element_type=f32)
        o_ref[0, ho, :, :] = leaky(acc + b3_ref[...])

    _fori(28, conv0_row)
    _fori(14, conv1_row)
    _fori(7, conv2_row)
    _fori(7, conv3_row)


# ------------------------------ forward pass ---------------------------------
def encoder_forward(x_nhwc, p):
    n = x_nhwc.shape[0]
    # Pre-pad spatially and replicate the single input channel across 32 lanes
    # so the first-layer block is lane-dense (avoids a 4-byte-granule DMA).
    xpad = jnp.pad(x_nhwc, ((0, 0), (1, 1), (1, 1), (0, 0)))
    xrep = jnp.broadcast_to(xpad, (n, 30, 30, 32)).astype(jnp.float32)

    w0 = p["w0"].reshape(9, 32).astype(jnp.float32)        # conv0 stays f32 (VPU)
    w1 = p["w1"].reshape(9, 32, 64).astype(jnp.bfloat16)
    w2 = p["w2"].reshape(9, 64, 64).astype(jnp.bfloat16)
    w3 = p["w3"].reshape(9, 64, 64).astype(jnp.bfloat16)
    b0 = p["b0"].reshape(1, 32).astype(jnp.float32)
    b1 = p["b1"].reshape(1, 64).astype(jnp.float32)
    b2 = p["b2"].reshape(1, 64).astype(jnp.float32)
    b3 = p["b3"].reshape(1, 64).astype(jnp.float32)

    conv_out = pl.pallas_call(
        _encoder_kernel,
        out_shape=jax.ShapeDtypeStruct((n, 7, 7, 64), jnp.float32),
        grid=(n,),
        in_specs=[
            pl.BlockSpec((1, 30, 30, 32), lambda b: (b, 0, 0, 0)),
            pl.BlockSpec((9, 32), lambda b: (0, 0)),
            pl.BlockSpec((1, 32), lambda b: (0, 0)),
            pl.BlockSpec((9, 32, 64), lambda b: (0, 0, 0)),
            pl.BlockSpec((1, 64), lambda b: (0, 0)),
            pl.BlockSpec((9, 64, 64), lambda b: (0, 0, 0)),
            pl.BlockSpec((1, 64), lambda b: (0, 0)),
            pl.BlockSpec((9, 64, 64), lambda b: (0, 0, 0)),
            pl.BlockSpec((1, 64), lambda b: (0, 0)),
        ],
        out_specs=pl.BlockSpec((1, 7, 7, 64), lambda b: (b, 0, 0, 0)),
        scratch_shapes=[
            pltpu.VMEM((30, 30, 32), jnp.float32),   # padded conv0 output
            pltpu.VMEM((16, 16, 64), jnp.float32),   # padded conv1 output
            pltpu.VMEM((9, 9, 64), jnp.float32),     # padded conv2 output
        ],
        compiler_params=pltpu.CompilerParams(
            dimension_semantics=("parallel",)),
    )(xrep, w0, b0, w1, b1, w2, b2, w3, b3)

    # torch.nn.Flatten flattens NCHW order -> transpose NHWC -> NCHW first.
    flat = jnp.transpose(conv_out, (0, 3, 1, 2)).reshape(n, 64 * 7 * 7)
    # Degenerate 3136x2 dense stays in XLA (per perf review); HIGHEST here costs
    # nothing (~12K FLOPs) and keeps the correctness check tight.
    return jnp.dot(flat, p["wd"], precision=lax.Precision.HIGHEST) + p["bd"]


# ------------------------- pure-JAX reference (check) ------------------------
def encoder_reference(x_nhwc, p):
    def conv_f32(x, w, b, stride):
        y = lax.conv_general_dilated(
            x, w, (stride, stride), ((1, 1), (1, 1)),
            dimension_numbers=("NHWC", "HWIO", "NHWC"),
            precision=lax.Precision.HIGHEST,
            preferred_element_type=jnp.float32) + b
        return jnp.where(y > 0, y, NEG_SLOPE * y)

    def conv_bf16(x, w, b, stride):
        y = lax.conv_general_dilated(
            x.astype(jnp.bfloat16), w.astype(jnp.bfloat16),
            (stride, stride), ((1, 1), (1, 1)),
            dimension_numbers=("NHWC", "HWIO", "NHWC"),
            preferred_element_type=jnp.float32) + b
        return jnp.where(y > 0, y, NEG_SLOPE * y)

    y = conv_f32(x_nhwc, p["w0"], p["b0"], 1)    # (N,28,28,32)
    y = conv_bf16(y, p["w1"], p["b1"], 2)        # (N,14,14,64)
    y = conv_bf16(y, p["w2"], p["b2"], 2)        # (N, 7, 7,64)
    y = conv_bf16(y, p["w3"], p["b3"], 1)        # (N, 7, 7,64)
    n = y.shape[0]
    flat = jnp.transpose(y, (0, 3, 1, 2)).reshape(n, 64 * 7 * 7)
    return jnp.dot(flat, p["wd"], precision=lax.Precision.HIGHEST) + p["bd"]


# ---------------------------------- main --------------------------------------
if __name__ == "__main__":
    key = jax.random.PRNGKey(0)
    ks = jax.random.split(key, 11)

    # Deterministic synthetic parameters (HWIO conv weights, (in,out) dense weight).
    params = {
        "w0": 0.1 * jax.random.normal(ks[0], (3, 3, 1, 32), jnp.float32),
        "b0": 0.1 * jax.random.normal(ks[1], (32,), jnp.float32),
        "w1": 0.1 * jax.random.normal(ks[2], (3, 3, 32, 64), jnp.float32),
        "b1": 0.1 * jax.random.normal(ks[3], (64,), jnp.float32),
        "w2": 0.1 * jax.random.normal(ks[4], (3, 3, 64, 64), jnp.float32),
        "b2": 0.1 * jax.random.normal(ks[5], (64,), jnp.float32),
        "w3": 0.1 * jax.random.normal(ks[6], (3, 3, 64, 64), jnp.float32),
        "b3": 0.1 * jax.random.normal(ks[7], (64,), jnp.float32),
        "wd": 0.05 * jax.random.normal(ks[8], (7 * 7 * 64, 2), jnp.float32),
        "bd": 0.05 * jax.random.normal(ks[9], (2,), jnp.float32),
    }

    # Input: PyTorch expects NCHW (2,1,28,28); here NHWC (2,28,28,1).
    x = jax.random.normal(ks[10], (2, 28, 28, 1), jnp.float32)

    out = jax.block_until_ready(jax.jit(encoder_forward)(x, params))
    ref = jax.block_until_ready(jax.jit(encoder_reference)(x, params))

    assert out.shape == (2, 2), out.shape
    assert jnp.allclose(out, ref, rtol=1e-3, atol=1e-3), (out, ref)
    print("KERNEL_OK")
</pallas_src>

<mosaic_0001>
module attributes {stable_mosaic.version = 11 : i64} {
  func.func @_encoder_kernel(%arg0: i32, %arg1: memref<1x30x30x32xf32, #tpu.memory_space<vmem>>, %arg2: memref<9x32xf32, #tpu.memory_space<vmem>>, %arg3: memref<1x32xf32, #tpu.memory_space<vmem>>, %arg4: memref<9x32x64xbf16, #tpu.memory_space<vmem>>, %arg5: memref<1x64xf32, #tpu.memory_space<vmem>>, %arg6: memref<9x64x64xbf16, #tpu.memory_space<vmem>>, %arg7: memref<1x64xf32, #tpu.memory_space<vmem>>, %arg8: memref<9x64x64xbf16, #tpu.memory_space<vmem>>, %arg9: memref<1x64xf32, #tpu.memory_space<vmem>>, %arg10: memref<1x7x7x64xf32, #tpu.memory_space<vmem>>, %arg11: memref<30x30x32xf32, #tpu.memory_space<vmem>>, %arg12: memref<16x16x64xf32, #tpu.memory_space<vmem>>, %arg13: memref<9x9x64xf32, #tpu.memory_space<vmem>>) attributes {dimension_semantics = [#tpu.dimension_semantics<parallel>], iteration_bounds = array<i64: 2>, scalar_prefetch = 0 : i64, scratch_operands = 3 : i64, tpu.core_type = #tpu.core_type<tc>, window_params = [{transform_indices = @transform_0, window_bounds = array<i64: 1, 30, 30, 32>}, {pipeline_mode = #tpu.pipeline_mode<synchronous>, transform_indices = @transform_1, window_bounds = array<i64: 9, 32>}, {pipeline_mode = #tpu.pipeline_mode<synchronous>, transform_indices = @transform_2, window_bounds = array<i64: 1, 32>}, {pipeline_mode = #tpu.pipeline_mode<synchronous>, transform_indices = @transform_3, window_bounds = array<i64: 9, 32, 64>}, {pipeline_mode = #tpu.pipeline_mode<synchronous>, transform_indices = @transform_4, window_bounds = array<i64: 1, 64>}, {pipeline_mode = #tpu.pipeline_mode<synchronous>, transform_indices = @transform_5, window_bounds = array<i64: 9, 64, 64>}, {pipeline_mode = #tpu.pipeline_mode<synchronous>, transform_indices = @transform_6, window_bounds = array<i64: 1, 64>}, {pipeline_mode = #tpu.pipeline_mode<synchronous>, transform_indices = @transform_7, window_bounds = array<i64: 9, 64, 64>}, {pipeline_mode = #tpu.pipeline_mode<synchronous>, transform_indices = @transform_8, window_bounds = array<i64: 1, 64>}, {transform_indices = @transform_9, window_bounds = array<i64: 1, 7, 7, 64>}]} {
    %cst = arith.constant 0.000000e+00 : f32
    %0 = vector.broadcast %cst : f32 to vector<30x32xf32>
    %cst_0 = arith.constant 0.000000e+00 : f32
    %1 = vector.broadcast %cst_0 : f32 to vector<30x1x32xf32>
    %c0 = arith.constant 0 : index
    %c0_1 = arith.constant 0 : index
    %c0_2 = arith.constant 0 : index
    %2 = vector.load %arg11[%c0, %c0_1, %c0_2] : memref<30x30x32xf32, #tpu.memory_space<vmem>>, vector<1x30x32xf32>
    %3 = vector.shape_cast %2 : vector<1x30x32xf32> to vector<30x32xf32>
    %4 = vector.shape_cast %0 : vector<30x32xf32> to vector<1x30x32xf32>
    tpu.vector_store %arg11[%c0, %c0_1, %c0_2], %4 {strides = array<i32>} : memref<30x30x32xf32, #tpu.memory_space<vmem>>, vector<1x30x32xf32>,
    %c29 = arith.constant 29 : index
    %c0_3 = arith.constant 0 : index
    %c0_4 = arith.constant 0 : index
    %5 = vector.load %arg11[%c29, %c0_3, %c0_4] : memref<30x30x32xf32, #tpu.memory_space<vmem>>, vector<1x30x32xf32>
    %6 = vector.shape_cast %5 : vector<1x30x32xf32> to vector<30x32xf32>
    %7 = vector.shape_cast %0 : vector<30x32xf32> to vector<1x30x32xf32>
    tpu.vector_store %arg11[%c29, %c0_3, %c0_4], %7 {strides = array<i32>} : memref<30x30x32xf32, #tpu.memory_space<vmem>>, vector<1x30x32xf32>,
    %c0_5 = arith.constant 0 : index
    %c0_6 = arith.constant 0 : index
    %c0_7 = arith.constant 0 : index
    %8 = vector.load %arg11[%c0_5, %c0_6, %c0_7] : memref<30x30x32xf32, #tpu.memory_space<vmem>>, vector<30x1x32xf32>
    tpu.vector_store %arg11[%c0_5, %c0_6, %c0_7], %1 {strides = array<i32>} : memref<30x30x32xf32, #tpu.memory_space<vmem>>, vector<30x1x32xf32>,
    %c0_8 = arith.constant 0 : index
    %c29_9 = arith.constant 29 : index
    %c0_10 = arith.constant 0 : index
    %9 = vector.load %arg11[%c0_8, %c29_9, %c0_10] : memref<30x30x32xf32, #tpu.memory_space<vmem>>, vector<30x1x32xf32>
    tpu.vector_store %arg11[%c0_8, %c29_9, %c0_10], %1 {strides = array<i32>} : memref<30x30x32xf32, #tpu.memory_space<vmem>>, vector<30x1x32xf32>,
    %cst_11 = arith.constant 0.000000e+00 : f32
    %10 = vector.broadcast %cst_11 : f32 to vector<16x64xf32>
    %cst_12 = arith.constant 0.000000e+00 : f32
    %11 = vector.broadcast %cst_12 : f32 to vector<16x1x64xf32>
    %c0_13 = arith.constant 0 : index
    %c0_14 = arith.constant 0 : index
    %c0_15 = arith.constant 0 : index
    %12 = vector.load %arg12[%c0_13, %c0_14, %c0_15] : memref<16x16x64xf32, #tpu.memory_space<vmem>>, vector<1x16x64xf32>
    %13 = vector.shape_cast %12 : vector<1x16x64xf32> to vector<16x64xf32>
    %14 = vector.shape_cast %10 : vector<16x64xf32> to vector<1x16x64xf32>
    tpu.vector_store %arg12[%c0_13, %c0_14, %c0_15], %14 {strides = array<i32>} : memref<16x16x64xf32, #tpu.memory_space<vmem>>, vector<1x16x64xf32>,
    %c15 = arith.constant 15 : index
    %c0_16 = arith.constant 0 : index
    %c0_17 = arith.constant 0 : index
    %15 = vector.load %arg12[%c15, %c0_16, %c0_17] : memref<16x16x64xf32, #tpu.memory_space<vmem>>, vector<1x16x64xf32>
    %16 = vector.shape_cast %15 : vector<1x16x64xf32> to vector<16x64xf32>
    %17 = vector.shape_cast %10 : vector<16x64xf32> to vector<1x16x64xf32>
    tpu.vector_store %arg12[%c15, %c0_16, %c0_17], %17 {strides = array<i32>} : memref<16x16x64xf32, #tpu.memory_space<vmem>>, vector<1x16x64xf32>,
    %c0_18 = arith.constant 0 : index
    %c0_19 = arith.constant 0 : index
    %c0_20 = arith.constant 0 : index
    %18 = vector.load %arg12[%c0_18, %c0_19, %c0_20] : memref<16x16x64xf32, #tpu.memory_space<vmem>>, vector<16x1x64xf32>
    tpu.vector_store %arg12[%c0_18, %c0_19, %c0_20], %11 {strides = array<i32>} : memref<16x16x64xf32, #tpu.memory_space<vmem>>, vector<16x1x64xf32>,
    %c0_21 = arith.constant 0 : index
    %c15_22 = arith.constant 15 : index
    %c0_23 = arith.constant 0 : index
    %19 = vector.load %arg12[%c0_21, %c15_22, %c0_23] : memref<16x16x64xf32, #tpu.memory_space<vmem>>, vector<16x1x64xf32>
    tpu.vector_store %arg12[%c0_21, %c15_22, %c0_23], %11 {strides = array<i32>} : memref<16x16x64xf32, #tpu.memory_space<vmem>>, vector<16x1x64xf32>,
    %cst_24 = arith.constant 0.000000e+00 : f32
    %20 = vector.broadcast %cst_24 : f32 to vector<9x64xf32>
    %cst_25 = arith.constant 0.000000e+00 : f32
    %21 = vector.broadcast %cst_25 : f32 to vector<9x1x64xf32>
    %c0_26 = arith.constant 0 : index
    %c0_27 = arith.constant 0 : index
    %c0_28 = arith.constant 0 : index
    %22 = vector.load %arg13[%c0_26, %c0_27, %c0_28] : memref<9x9x64xf32, #tpu.memory_space<vmem>>, vector<1x9x64xf32>
    %23 = vector.shape_cast %22 : vector<1x9x64xf32> to vector<9x64xf32>
    %24 = vector.shape_cast %20 : vector<9x64xf32> to vector<1x9x64xf32>
    tpu.vector_store %arg13[%c0_26, %c0_27, %c0_28], %24 {strides = array<i32>} : memref<9x9x64xf32, #tpu.memory_space<vmem>>, vector<1x9x64xf32>,
    %c8 = arith.constant 8 : index
    %c0_29 = arith.constant 0 : index
    %c0_30 = arith.constant 0 : index
    %25 = vector.load %arg13[%c8, %c0_29, %c0_30] : memref<9x9x64xf32, #tpu.memory_space<vmem>>, vector<1x9x64xf32>
    %26 = vector.shape_cast %25 : vector<1x9x64xf32> to vector<9x64xf32>
    %27 = vector.shape_cast %20 : vector<9x64xf32> to vector<1x9x64xf32>
    tpu.vector_store %arg13[%c8, %c0_29, %c0_30], %27 {strides = array<i32>} : memref<9x9x64xf32, #tpu.memory_space<vmem>>, vector<1x9x64xf32>,
    %c0_31 = arith.constant 0 : index
    %c0_32 = arith.constant 0 : index
    %c0_33 = arith.constant 0 : index
    %28 = vector.load %arg13[%c0_31, %c0_32, %c0_33] : memref<9x9x64xf32, #tpu.memory_space<vmem>>, vector<9x1x64xf32>
    tpu.vector_store %arg13[%c0_31, %c0_32, %c0_33], %21 {strides = array<i32>} : memref<9x9x64xf32, #tpu.memory_space<vmem>>, vector<9x1x64xf32>,
    %c0_34 = arith.constant 0 : index
    %c8_35 = arith.constant 8 : index
    %c0_36 = arith.constant 0 : index
    %29 = vector.load %arg13[%c0_34, %c8_35, %c0_36] : memref<9x9x64xf32, #tpu.memory_space<vmem>>, vector<9x1x64xf32>
    tpu.vector_store %arg13[%c0_34, %c8_35, %c0_36], %21 {strides = array<i32>} : memref<9x9x64xf32, #tpu.memory_space<vmem>>, vector<9x1x64xf32>,
    %c0_i32 = arith.constant 0 : i32
    %c28_i32 = arith.constant 28 : i32
    %30 = arith.addi %c0_i32, %c28_i32 : i32
    %c1_i32 = arith.constant 1 : i32
    scf.for %arg14 = %c0_i32 to %30 step %c1_i32  : i32 {
      %cst_48 = arith.constant 0.000000e+00 : f32
      %34 = vector.broadcast %cst_48 : f32 to vector<28x32xf32>
      %c0_i32_49 = arith.constant 0 : i32
      %35 = arith.addi %arg14, %c0_i32_49 : i32
      %c0_50 = arith.constant 0 : index
      %36 = arith.index_cast %35 : i32 to index
      %c0_51 = arith.constant 0 : index
      %c0_52 = arith.constant 0 : index
      %37 = vector.load %arg1[%c0_50, %36, %c0_51, %c0_52] : memref<1x30x30x32xf32, #tpu.memory_space<vmem>>, vector<1x1x28x32xf32>
      %38 = vector.shape_cast %37 : vector<1x1x28x32xf32> to vector<28x32xf32>
      %c0_53 = arith.constant 0 : index
      %c0_54 = arith.constant 0 : index
      %39 = vector.load %arg2[%c0_53, %c0_54] : memref<9x32xf32, #tpu.memory_space<vmem>>, vector<1x32xf32>
      %40 = vector.broadcast %39 : vector<1x32xf32> to vector<28x32xf32>
      %41 = arith.mulf %38, %40 : vector<28x32xf32>
      %42 = arith.addf %34, %41 : vector<28x32xf32>
      %c0_i32_55 = arith.constant 0 : i32
      %43 = arith.addi %arg14, %c0_i32_55 : i32
      %c0_56 = arith.constant 0 : index
      %44 = arith.index_cast %43 : i32 to index
      %c1 = arith.constant 1 : index
      %c0_57 = arith.constant 0 : index
      %45 = vector.load %arg1[%c0_56, %44, %c1, %c0_57] : memref<1x30x30x32xf32, #tpu.memory_space<vmem>>, vector<1x1x28x32xf32>
      %46 = vector.shape_cast %45 : vector<1x1x28x32xf32> to vector<28x32xf32>
      %c1_58 = arith.constant 1 : index
      %c0_59 = arith.constant 0 : index
      %47 = vector.load %arg2[%c1_58, %c0_59] : memref<9x32xf32, #tpu.memory_space<vmem>>, vector<1x32xf32>
      %48 = vector.broadcast %47 : vector<1x32xf32> to vector<28x32xf32>
      %49 = arith.mulf %46, %48 : vector<28x32xf32>
      %50 = arith.addf %42, %49 : vector<28x32xf32>
      %c0_i32_60 = arith.constant 0 : i32
      %51 = arith.addi %arg14, %c0_i32_60 : i32
      %c0_61 = arith.constant 0 : index
      %52 = arith.index_cast %51 : i32 to index
      %c2 = arith.constant 2 : index
      %c0_62 = arith.constant 0 : index
      %53 = vector.load %arg1[%c0_61, %52, %c2, %c0_62] : memref<1x30x30x32xf32, #tpu.memory_space<vmem>>, vector<1x1x28x32xf32>
      %54 = vector.shape_cast %53 : vector<1x1x28x32xf32> to vector<28x32xf32>
      %c2_63 = arith.constant 2 : index
      %c0_64 = arith.constant 0 : index
      %55 = vector.load %arg2[%c2_63, %c0_64] : memref<9x32xf32, #tpu.memory_space<vmem>>, vector<1x32xf32>
      %56 = vector.broadcast %55 : vector<1x32xf32> to vector<28x32xf32>
      %57 = arith.mulf %54, %56 : vector<28x32xf32>
      %58 = arith.addf %50, %57 : vector<28x32xf32>
      %c1_i32_65 = arith.constant 1 : i32
      %59 = arith.addi %arg14, %c1_i32_65 : i32
      %c0_66 = arith.constant 0 : index
      %60 = arith.index_cast %59 : i32 to index
      %c0_67 = arith.constant 0 : index
      %c0_68 = arith.constant 0 : index
      %61 = vector.load %arg1[%c0_66, %60, %c0_67, %c0_68] : memref<1x30x30x32xf32, #tpu.memory_space<vmem>>, vector<1x1x28x32xf32>
      %62 = vector.shape_cast %61 : vector<1x1x28x32xf32> to vector<28x32xf32>
      %c3 = arith.constant 3 : index
      %c0_69 = arith.constant 0 : index
      %63 = vector.load %arg2[%c3, %c0_69] : memref<9x32xf32, #tpu.memory_space<vmem>>, vector<1x32xf32>
      %64 = vector.broadcast %63 : vector<1x32xf32> to vector<28x32xf32>
      %65 = arith.mulf %62, %64 : vector<28x32xf32>
      %66 = arith.addf %58, %65 : vector<28x32xf32>
      %c1_i32_70 = arith.constant 1 : i32
      %67 = arith.addi %arg14, %c1_i32_70 : i32
      %c0_71 = arith.constant 0 : index
      %68 = arith.index_cast %67 : i32 to index
      %c1_72 = arith.constant 1 : index
      %c0_73 = arith.constant 0 : index
      %69 = vector.load %arg1[%c0_71, %68, %c1_72, %c0_73] : memref<1x30x30x32xf32, #tpu.memory_space<vmem>>, vector<1x1x28x32xf32>
      %70 = vector.shape_cast %69 : vector<1x1x28x32xf32> to vector<28x32xf32>
      %c4 = arith.constant 4 : index
      %c0_74 = arith.constant 0 : index
      %71 = vector.load %arg2[%c4, %c0_74] : memref<9x32xf32, #tpu.memory_space<vmem>>, vector<1x32xf32>
      %72 = vector.broadcast %71 : vector<1x32xf32> to vector<28x32xf32>
      %73 = arith.mulf %70, %72 : vector<28x32xf32>
      %74 = arith.addf %66, %73 : vector<28x32xf32>
      %c1_i32_75 = arith.constant 1 : i32
      %75 = arith.addi %arg14, %c1_i32_75 : i32
      %c0_76 = arith.constant 0 : index
      %76 = arith.index_cast %75 : i32 to index
      %c2_77 = arith.constant 2 : index
      %c0_78 = arith.constant 0 : index
      %77 = vector.load %arg1[%c0_76, %76, %c2_77, %c0_78] : memref<1x30x30x32xf32, #tpu.memory_space<vmem>>, vector<1x1x28x32xf32>
      %78 = vector.shape_cast %77 : vector<1x1x28x32xf32> to vector<28x32xf32>
      %c5 = arith.constant 5 : index
      %c0_79 = arith.constant 0 : index
      %79 = vector.load %arg2[%c5, %c0_79] : memref<9x32xf32, #tpu.memory_space<vmem>>, vector<1x32xf32>
      %80 = vector.broadcast %79 : vector<1x32xf32> to vector<28x32xf32>
      %81 = arith.mulf %78, %80 : vector<28x32xf32>
      %82 = arith.addf %74, %81 : vector<28x32xf32>
      %c2_i32 = arith.constant 2 : i32
      %83 = arith.addi %arg14, %c2_i32 : i32
      %c0_80 = arith.constant 0 : index
      %84 = arith.index_cast %83 : i32 to index
      %c0_81 = arith.constant 0 : index
      %c0_82 = arith.constant 0 : index
      %85 = vector.load %arg1[%c0_80, %84, %c0_81, %c0_82] : memref<1x30x30x32xf32, #tpu.memory_space<vmem>>, vector<1x1x28x32xf32>
      %86 = vector.shape_cast %85 : vector<1x1x28x32xf32> to vector<28x32xf32>
      %c6 = arith.constant 6 : index
      %c0_83 = arith.constant 0 : index
      %87 = vector.load %arg2[%c6, %c0_83] : memref<9x32xf32, #tpu.memory_space<vmem>>, vector<1x32xf32>
      %88 = vector.broadcast %87 : vector<1x32xf32> to vector<28x32xf32>
      %89 = arith.mulf %86, %88 : vector<28x32xf32>
      %90 = arith.addf %82, %89 : vector<28x32xf32>
      %c2_i32_84 = arith.constant 2 : i32
      %91 = arith.addi %arg14, %c2_i32_84 : i32
      %c0_85 = arith.constant 0 : index
      %92 = arith.index_cast %91 : i32 to index
      %c1_86 = arith.constant 1 : index
      %c0_87 = arith.constant 0 : index
      %93 = vector.load %arg1[%c0_85, %92, %c1_86, %c0_87] : memref<1x30x30x32xf32, #tpu.memory_space<vmem>>, vector<1x1x28x32xf32>
      %94 = vector.shape_cast %93 : vector<1x1x28x32xf32> to vector<28x32xf32>
      %c7 = arith.constant 7 : index
      %c0_88 = arith.constant 0 : index
      %95 = vector.load %arg2[%c7, %c0_88] : memref<9x32xf32, #tpu.memory_space<vmem>>, vector<1x32xf32>
      %96 = vector.broadcast %95 : vector<1x32xf32> to vector<28x32xf32>
      %97 = arith.mulf %94, %96 : vector<28x32xf32>
      %98 = arith.addf %90, %97 : vector<28x32xf32>
      %c2_i32_89 = arith.constant 2 : i32
      %99 = arith.addi %arg14, %c2_i32_89 : i32
      %c0_90 = arith.constant 0 : index
      %100 = arith.index_cast %99 : i32 to index
      %c2_91 = arith.constant 2 : index
      %c0_92 = arith.constant 0 : index
      %101 = vector.load %arg1[%c0_90, %100, %c2_91, %c0_92] : memref<1x30x30x32xf32, #tpu.memory_space<vmem>>, vector<1x1x28x32xf32>
      %102 = vector.shape_cast %101 : vector<1x1x28x32xf32> to vector<28x32xf32>
      %c8_93 = arith.constant 8 : index
      %c0_94 = arith.constant 0 : index
      %103 = vector.load %arg2[%c8_93, %c0_94] : memref<9x32xf32, #tpu.memory_space<vmem>>, vector<1x32xf32>
      %104 = vector.broadcast %103 : vector<1x32xf32> to vector<28x32xf32>
      %105 = arith.mulf %102, %104 : vector<28x32xf32>
      %106 = arith.addf %98, %105 : vector<28x32xf32>
      %c0_95 = arith.constant 0 : index
      %c0_96 = arith.constant 0 : index
      %107 = vector.load %arg3[%c0_95, %c0_96] : memref<1x32xf32, #tpu.memory_space<vmem>>, vector<1x32xf32>
      %108 = vector.broadcast %107 : vector<1x32xf32> to vector<28x32xf32>
      %109 = arith.addf %106, %108 : vector<28x32xf32>
      %cst_97 = arith.constant 0.000000e+00 : f32
      %110 = vector.broadcast %cst_97 : f32 to vector<28x32xf32>
      %111 = arith.cmpf ogt, %109, %110 : vector<28x32xf32>
      %cst_98 = arith.constant 0.00999999977 : f32
      %112 = vector.broadcast %cst_98 : f32 to vector<28x32xf32>
      %113 = arith.mulf %112, %109 : vector<28x32xf32>
      %114 = arith.select %111, %109, %113 : vector<28x32xi1>, vector<28x32xf32>
      %c1_i32_99 = arith.constant 1 : i32
      %115 = arith.addi %arg14, %c1_i32_99 : i32
      %116 = arith.index_cast %115 : i32 to index
      %c1_100 = arith.constant 1 : index
      %c0_101 = arith.constant 0 : index
      %117 = vector.load %arg11[%116, %c1_100, %c0_101] : memref<30x30x32xf32, #tpu.memory_space<vmem>>, vector<1x28x32xf32>
      %118 = vector.shape_cast %117 : vector<1x28x32xf32> to vector<28x32xf32>
      %119 = vector.shape_cast %114 : vector<28x32xf32> to vector<1x28x32xf32>
      tpu.vector_store %arg11[%116, %c1_100, %c0_101], %119 {strides = array<i32>} : memref<30x30x32xf32, #tpu.memory_space<vmem>>, vector<1x28x32xf32>,
    }
    %c28_i32_37 = arith.constant 28 : i32
    %c0_i32_38 = arith.constant 0 : i32
    %c14_i32 = arith.constant 14 : i32
    %31 = arith.addi %c0_i32_38, %c14_i32 : i32
    %c1_i32_39 = arith.constant 1 : i32
    scf.for %arg14 = %c0_i32_38 to %31 step %c1_i32_39  : i32 {
      %cst_48 = arith.constant 0.000000e+00 : f32
      %34 = vector.broadcast %cst_48 : f32 to vector<14x64xf32>
      %c2_i32 = arith.constant 2 : i32
      %35 = arith.muli %c2_i32, %arg14 : i32
      %c0_i32_49 = arith.constant 0 : i32
      %36 = arith.addi %35, %c0_i32_49 : i32
      %37 = arith.index_cast %36 : i32 to index
      %c0_50 = arith.constant 0 : index
      %c0_51 = arith.constant 0 : index
      %38 = tpu.strided_load %arg11[%37, %c0_50, %c0_51] {strides = array<i32: 1, 2, 1>} : memref<30x30x32xf32, #tpu.memory_space<vmem>>, vector<1x14x32xf32>
      %39 = vector.shape_cast %38 : vector<1x14x32xf32> to vector<14x32xf32>
      %40 = arith.truncf %39 : vector<14x32xf32> to vector<14x32xbf16>
      %c0_52 = arith.constant 0 : index
      %c0_53 = arith.constant 0 : index
      %c0_54 = arith.constant 0 : index
      %41 = vector.load %arg4[%c0_52, %c0_53, %c0_54] : memref<9x32x64xbf16, #tpu.memory_space<vmem>>, vector<1x32x64xbf16>
      %42 = vector.shape_cast %41 : vector<1x32x64xbf16> to vector<32x64xbf16>
      %cst_55 = arith.constant dense<0.000000e+00> : vector<14x64xf32>
      %43 = tpu.matmul %40, %42, %cst_55 {dimension_numbers = #tpu.dot_dimension_numbers<[1], [0], [0], [1], [0, 0, 1, 1], [], []>} : vector<14x32xbf16>, vector<32x64xbf16>, vector<14x64xf32> -> vector<14x64xf32>
      %44 = arith.addf %34, %43 : vector<14x64xf32>
      %c2_i32_56 = arith.constant 2 : i32
      %45 = arith.muli %c2_i32_56, %arg14 : i32
      %c0_i32_57 = arith.constant 0 : i32
      %46 = arith.addi %45, %c0_i32_57 : i32
      %47 = arith.index_cast %46 : i32 to index
      %c1 = arith.constant 1 : index
      %c0_58 = arith.constant 0 : index
      %48 = tpu.strided_load %arg11[%47, %c1, %c0_58] {strides = array<i32: 1, 2, 1>} : memref<30x30x32xf32, #tpu.memory_space<vmem>>, vector<1x14x32xf32>
      %49 = vector.shape_cast %48 : vector<1x14x32xf32> to vector<14x32xf32>
      %50 = arith.truncf %49 : vector<14x32xf32> to vector<14x32xbf16>
      %c1_59 = arith.constant 1 : index
      %c0_60 = arith.constant 0 : index
      %c0_61 = arith.constant 0 : index
      %51 = vector.load %arg4[%c1_59, %c0_60, %c0_61] : memref<9x32x64xbf16, #tpu.memory_space<vmem>>, vector<1x32x64xbf16>
      %52 = vector.shape_cast %51 : vector<1x32x64xbf16> to vector<32x64xbf16>
      %cst_62 = arith.constant dense<0.000000e+00> : vector<14x64xf32>
      %53 = tpu.matmul %50, %52, %cst_62 {dimension_numbers = #tpu.dot_dimension_numbers<[1], [0], [0], [1], [0, 0, 1, 1], [], []>} : vector<14x32xbf16>, vector<32x64xbf16>, vector<14x64xf32> -> vector<14x64xf32>
      %54 = arith.addf %44, %53 : vector<14x64xf32>
      %c2_i32_63 = arith.constant 2 : i32
      %55 = arith.muli %c2_i32_63, %arg14 : i32
      %c0_i32_64 = arith.constant 0 : i32
      %56 = arith.addi %55, %c0_i32_64 : i32
      %57 = arith.index_cast %56 : i32 to index
      %c2 = arith.constant 2 : index
      %c0_65 = arith.constant 0 : index
      %58 = tpu.strided_load %arg11[%57, %c2, %c0_65] {strides = array<i32: 1, 2, 1>} : memref<30x30x32xf32, #tpu.memory_space<vmem>>, vector<1x14x32xf32>
      %59 = vector.shape_cast %58 : vector<1x14x32xf32> to vector<14x32xf32>
      %60 = arith.truncf %59 : vector<14x32xf32> to vector<14x32xbf16>
      %c2_66 = arith.constant 2 : index
      %c0_67 = arith.constant 0 : index
      %c0_68 = arith.constant 0 : index
      %61 = vector.load %arg4[%c2_66, %c0_67, %c0_68] : memref<9x32x64xbf16, #tpu.memory_space<vmem>>, vector<1x32x64xbf16>
      %62 = vector.shape_cast %61 : vector<1x32x64xbf16> to vector<32x64xbf16>
      %cst_69 = arith.constant dense<0.000000e+00> : vector<14x64xf32>
      %63 = tpu.matmul %60, %62, %cst_69 {dimension_numbers = #tpu.dot_dimension_numbers<[1], [0], [0], [1], [0, 0, 1, 1], [], []>} : vector<14x32xbf16>, vector<32x64xbf16>, vector<14x64xf32> -> vector<14x64xf32>
      %64 = arith.addf %54, %63 : vector<14x64xf32>
      %c2_i32_70 = arith.constant 2 : i32
      %65 = arith.muli %c2_i32_70, %arg14 : i32
      %c1_i32_71 = arith.constant 1 : i32
      %66 = arith.addi %65, %c1_i32_71 : i32
      %67 = arith.index_cast %66 : i32 to index
      %c0_72 = arith.constant 0 : index
      %c0_73 = arith.constant 0 : index
      %68 = tpu.strided_load %arg11[%67, %c0_72, %c0_73] {strides = array<i32: 1, 2, 1>} : memref<30x30x32xf32, #tpu.memory_space<vmem>>, vector<1x14x32xf32>
      %69 = vector.shape_cast %68 : vector<1x14x32xf32> to vector<14x32xf32>
      %70 = arith.truncf %69 : vector<14x32xf32> to vector<14x32xbf16>
      %c3 = arith.constant 3 : index
      %c0_74 = arith.constant 0 : index
      %c0_75 = arith.constant 0 : index
      %71 = vector.load %arg4[%c3, %c0_74, %c0_75] : memref<9x32x64xbf16, #tpu.memory_space<vmem>>, vector<1x32x64xbf16>
      %72 = vector.shape_cast %71 : vector<1x32x64xbf16> to vector<32x64xbf16>
      %cst_76 = arith.constant dense<0.000000e+00> : vector<14x64xf32>
      %73 = tpu.matmul %70, %72, %cst_76 {dimension_numbers = #tpu.dot_dimension_numbers<[1], [0], [0], [1], [0, 0, 1, 1], [], []>} : vector<14x32xbf16>, vector<32x64xbf16>, vector<14x64xf32> -> vector<14x64xf32>
      %74 = arith.addf %64, %73 : vector<14x64xf32>
      %c2_i32_77 = arith.constant 2 : i32
      %75 = arith.muli %c2_i32_77, %arg14 : i32
      %c1_i32_78 = arith.constant 1 : i32
      %76 = arith.addi %75, %c1_i32_78 : i32
      %77 = arith.index_cast %76 : i32 to index
      %c1_79 = arith.constant 1 : index
      %c0_80 = arith.constant 0 : index
      %78 = tpu.strided_load %arg11[%77, %c1_79, %c0_80] {strides = array<i32: 1, 2, 1>} : memref<30x30x32xf32, #tpu.memory_space<vmem>>, vector<1x14x32xf32>
      %79 = vector.shape_cast %78 : vector<1x14x32xf32> to vector<14x32xf32>
      %80 = arith.truncf %79 : vector<14x32xf32> to vector<14x32xbf16>
      %c4 = arith.constant 4 : index
      %c0_81 = arith.constant 0 : index
      %c0_82 = arith.constant 0 : index
      %81 = vector.load %arg4[%c4, %c0_81, %c0_82] : memref<9x32x64xbf16, #tpu.memory_space<vmem>>, vector<1x32x64xbf16>
      %82 = vector.shape_cast %81 : vector<1x32x64xbf16> to vector<32x64xbf16>
      %cst_83 = arith.constant dense<0.000000e+00> : vector<14x64xf32>
      %83 = tpu.matmul %80, %82, %cst_83 {dimension_numbers = #tpu.dot_dimension_numbers<[1], [0], [0], [1], [0, 0, 1, 1], [], []>} : vector<14x32xbf16>, vector<32x64xbf16>, vector<14x64xf32> -> vector<14x64xf32>
      %84 = arith.addf %74, %83 : vector<14x64xf32>
      %c2_i32_84 = arith.constant 2 : i32
      %85 = arith.muli %c2_i32_84, %arg14 : i32
      %c1_i32_85 = arith.constant 1 : i32
      %86 = arith.addi %85, %c1_i32_85 : i32
      %87 = arith.index_cast %86 : i32 to index
      %c2_86 = arith.constant 2 : index
      %c0_87 = arith.constant 0 : index
      %88 = tpu.strided_load %arg11[%87, %c2_86, %c0_87] {strides = array<i32: 1, 2, 1>} : memref<30x30x32xf32, #tpu.memory_space<vmem>>, vector<1x14x32xf32>
      %89 = vector.shape_cast %88 : vector<1x14x32xf32> to vector<14x32xf32>
      %90 = arith.truncf %89 : vector<14x32xf32> to vector<14x32xbf16>
      %c5 = arith.constant 5 : index
      %c0_88 = arith.constant 0 : index
      %c0_89 = arith.constant 0 : index
      %91 = vector.load %arg4[%c5, %c0_88, %c0_89] : memref<9x32x64xbf16, #tpu.memory_space<vmem>>, vector<1x32x64xbf16>
      %92 = vector.shape_cast %91 : vector<1x32x64xbf16> to vector<32x64xbf16>
      %cst_90 = arith.constant dense<0.000000e+00> : vector<14x64xf32>
      %93 = tpu.matmul %90, %92, %cst_90 {dimension_numbers = #tpu.dot_dimension_numbers<[1], [0], [0], [1], [0, 0, 1, 1], [], []>} : vector<14x32xbf16>, vector<32x64xbf16>, vector<14x64xf32> -> vector<14x64xf32>
      %94 = arith.addf %84, %93 : vector<14x64xf32>
      %c2_i32_91 = arith.constant 2 : i32
      %95 = arith.muli %c2_i32_91, %arg14 : i32
      %c2_i32_92 = arith.constant 2 : i32
      %96 = arith.addi %95, %c2_i32_92 : i32
      %97 = arith.index_cast %96 : i32 to index
      %c0_93 = arith.constant 0 : index
      %c0_94 = arith.constant 0 : index
      %98 = tpu.strided_load %arg11[%97, %c0_93, %c0_94] {strides = array<i32: 1, 2, 1>} : memref<30x30x32xf32, #tpu.memory_space<vmem>>, vector<1x14x32xf32>
      %99 = vector.shape_cast %98 : vector<1x14x32xf32> to vector<14x32xf32>
      %100 = arith.truncf %99 : vector<14x32xf32> to vector<14x32xbf16>
      %c6 = arith.constant 6 : index
      %c0_95 = arith.constant 0 : index
      %c0_96 = arith.constant 0 : index
      %101 = vector.load %arg4[%c6, %c0_95, %c0_96] : memref<9x32x64xbf16, #tpu.memory_space<vmem>>, vector<1x32x64xbf16>
      %102 = vector.shape_cast %101 : vector<1x32x64xbf16> to vector<32x64xbf16>
      %cst_97 = arith.constant dense<0.000000e+00> : vector<14x64xf32>
      %103 = tpu.matmul %100, %102, %cst_97 {dimension_numbers = #tpu.dot_dimension_numbers<[1], [0], [0], [1], [0, 0, 1, 1], [], []>} : vector<14x32xbf16>, vector<32x64xbf16>, vector<14x64xf32> -> vector<14x64xf32>
      %104 = arith.addf %94, %103 : vector<14x64xf32>
      %c2_i32_98 = arith.constant 2 : i32
      %105 = arith.muli %c2_i32_98, %arg14 : i32
      %c2_i32_99 = arith.constant 2 : i32
      %106 = arith.addi %105, %c2_i32_99 : i32
      %107 = arith.index_cast %106 : i32 to index
      %c1_100 = arith.constant 1 : index
      %c0_101 = arith.constant 0 : index
      %108 = tpu.strided_load %arg11[%107, %c1_100, %c0_101] {strides = array<i32: 1, 2, 1>} : memref<30x30x32xf32, #tpu.memory_space<vmem>>, vector<1x14x32xf32>
      %109 = vector.shape_cast %108 : vector<1x14x32xf32> to vector<14x32xf32>
      %110 = arith.truncf %109 : vector<14x32xf32> to vector<14x32xbf16>
      %c7 = arith.constant 7 : index
      %c0_102 = arith.constant 0 : index
      %c0_103 = arith.constant 0 : index
      %111 = vector.load %arg4[%c7, %c0_102, %c0_103] : memref<9x32x64xbf16, #tpu.memory_space<vmem>>, vector<1x32x64xbf16>
      %112 = vector.shape_cast %111 : vector<1x32x64xbf16> to vector<32x64xbf16>
      %cst_104 = arith.constant dense<0.000000e+00> : vector<14x64xf32>
      %113 = tpu.matmul %110, %112, %cst_104 {dimension_numbers = #tpu.dot_dimension_numbers<[1], [0], [0], [1], [0, 0, 1, 1], [], []>} : vector<14x32xbf16>, vector<32x64xbf16>, vector<14x64xf32> -> vector<14x64xf32>
      %114 = arith.addf %104, %113 : vector<14x64xf32>
      %c2_i32_105 = arith.constant 2 : i32
      %115 = arith.muli %c2_i32_105, %arg14 : i32
      %c2_i32_106 = arith.constant 2 : i32
      %116 = arith.addi %115, %c2_i32_106 : i32
      %117 = arith.index_cast %116 : i32 to index
      %c2_107 = arith.constant 2 : index
      %c0_108 = arith.constant 0 : index
      %118 = tpu.strided_load %arg11[%117, %c2_107, %c0_108] {strides = array<i32: 1, 2, 1>} : memref<30x30x32xf32, #tpu.memory_space<vmem>>, vector<1x14x32xf32>
      %119 = vector.shape_cast %118 : vector<1x14x32xf32> to vector<14x32xf32>
      %120 = arith.truncf %119 : vector<14x32xf32> to vector<14x32xbf16>
      %c8_109 = arith.constant 8 : index
      %c0_110 = arith.constant 0 : index
      %c0_111 = arith.constant 0 : index
      %121 = vector.load %arg4[%c8_109, %c0_110, %c0_111] : memref<9x32x64xbf16, #tpu.memory_space<vmem>>, vector<1x32x64xbf16>
      %122 = vector.shape_cast %121 : vector<1x32x64xbf16> to vector<32x64xbf16>
      %cst_112 = arith.constant dense<0.000000e+00> : vector<14x64xf32>
      %123 = tpu.matmul %120, %122, %cst_112 {dimension_numbers = #tpu.dot_dimension_numbers<[1], [0], [0], [1], [0, 0, 1, 1], [], []>} : vector<14x32xbf16>, vector<32x64xbf16>, vector<14x64xf32> -> vector<14x64xf32>
      %124 = arith.addf %114, %123 : vector<14x64xf32>
      %c0_113 = arith.constant 0 : index
      %c0_114 = arith.constant 0 : index
      %125 = vector.load %arg5[%c0_113, %c0_114] : memref<1x64xf32, #tpu.memory_space<vmem>>, vector<1x64xf32>
      %126 = vector.broadcast %125 : vector<1x64xf32> to vector<14x64xf32>
      %127 = arith.addf %124, %126 : vector<14x64xf32>
      %cst_115 = arith.constant 0.000000e+00 : f32
      %128 = vector.broadcast %cst_115 : f32 to vector<14x64xf32>
      %129 = arith.cmpf ogt, %127, %128 : vector<14x64xf32>
      %cst_116 = arith.constant 0.00999999977 : f32
      %130 = vector.broadcast %cst_116 : f32 to vector<14x64xf32>
      %131 = arith.mulf %130, %127 : vector<14x64xf32>
      %132 = arith.select %129, %127, %131 : vector<14x64xi1>, vector<14x64xf32>
      %c1_i32_117 = arith.constant 1 : i32
      %133 = arith.addi %arg14, %c1_i32_117 : i32
      %134 = arith.index_cast %133 : i32 to index
      %c1_118 = arith.constant 1 : index
      %c0_119 = arith.constant 0 : index
      %135 = vector.load %arg12[%134, %c1_118, %c0_119] : memref<16x16x64xf32, #tpu.memory_space<vmem>>, vector<1x14x64xf32>
      %136 = vector.shape_cast %135 : vector<1x14x64xf32> to vector<14x64xf32>
      %137 = vector.shape_cast %132 : vector<14x64xf32> to vector<1x14x64xf32>
      tpu.vector_store %arg12[%134, %c1_118, %c0_119], %137 {strides = array<i32>} : memref<16x16x64xf32, #tpu.memory_space<vmem>>, vector<1x14x64xf32>,
    }
    %c14_i32_40 = arith.constant 14 : i32
    %c0_i32_41 = arith.constant 0 : i32
    %c7_i32 = arith.constant 7 : i32
    %32 = arith.addi %c0_i32_41, %c7_i32 : i32
    %c1_i32_42 = arith.constant 1 : i32
    scf.for %arg14 = %c0_i32_41 to %32 step %c1_i32_42  : i32 {
      %cst_48 = arith.constant 0.000000e+00 : f32
      %34 = vector.broadcast %cst_48 : f32 to vector<7x64xf32>
      %c2_i32 = arith.constant 2 : i32
      %35 = arith.muli %c2_i32, %arg14 : i32
      %c0_i32_49 = arith.constant 0 : i32
      %36 = arith.addi %35, %c0_i32_49 : i32
      %37 = arith.index_cast %36 : i32 to index
      %c0_50 = arith.constant 0 : index
      %c0_51 = arith.constant 0 : index
      %38 = tpu.strided_load %arg12[%37, %c0_50, %c0_51] {strides = array<i32: 1, 2, 1>} : memref<16x16x64xf32, #tpu.memory_space<vmem>>, vector<1x7x64xf32>
      %39 = vector.shape_cast %38 : vector<1x7x64xf32> to vector<7x64xf32>
      %40 = arith.truncf %39 : vector<7x64xf32> to vector<7x64xbf16>
      %c0_52 = arith.constant 0 : index
      %c0_53 = arith.constant 0 : index
      %c0_54 = arith.constant 0 : index
      %41 = vector.load %arg6[%c0_52, %c0_53, %c0_54] : memref<9x64x64xbf16, #tpu.memory_space<vmem>>, vector<1x64x64xbf16>
      %42 = vector.shape_cast %41 : vector<1x64x64xbf16> to vector<64x64xbf16>
      %cst_55 = arith.constant dense<0.000000e+00> : vector<7x64xf32>
      %43 = tpu.matmul %40, %42, %cst_55 {dimension_numbers = #tpu.dot_dimension_numbers<[1], [0], [0], [1], [0, 0, 1, 1], [], []>} : vector<7x64xbf16>, vector<64x64xbf16>, vector<7x64xf32> -> vector<7x64xf32>
      %44 = arith.addf %34, %43 : vector<7x64xf32>
      %c2_i32_56 = arith.constant 2 : i32
      %45 = arith.muli %c2_i32_56, %arg14 : i32
      %c0_i32_57 = arith.constant 0 : i32
      %46 = arith.addi %45, %c0_i32_57 : i32
      %47 = arith.index_cast %46 : i32 to index
      %c1 = arith.constant 1 : index
      %c0_58 = arith.constant 0 : index
      %48 = tpu.strided_load %arg12[%47, %c1, %c0_58] {strides = array<i32: 1, 2, 1>} : memref<16x16x64xf32, #tpu.memory_space<vmem>>, vector<1x7x64xf32>
      %49 = vector.shape_cast %48 : vector<1x7x64xf32> to vector<7x64xf32>
      %50 = arith.truncf %49 : vector<7x64xf32> to vector<7x64xbf16>
      %c1_59 = arith.constant 1 : index
      %c0_60 = arith.constant 0 : index
      %c0_61 = arith.constant 0 : index
      %51 = vector.load %arg6[%c1_59, %c0_60, %c0_61] : memref<9x64x64xbf16, #tpu.memory_space<vmem>>, vector<1x64x64xbf16>
      %52 = vector.shape_cast %51 : vector<1x64x64xbf16> to vector<64x64xbf16>
      %cst_62 = arith.constant dense<0.000000e+00> : vector<7x64xf32>
      %53 = tpu.matmul %50, %52, %cst_62 {dimension_numbers = #tpu.dot_dimension_numbers<[1], [0], [0], [1], [0, 0, 1, 1], [], []>} : vector<7x64xbf16>, vector<64x64xbf16>, vector<7x64xf32> -> vector<7x64xf32>
      %54 = arith.addf %44, %53 : vector<7x64xf32>
      %c2_i32_63 = arith.constant 2 : i32
      %55 = arith.muli %c2_i32_63, %arg14 : i32
      %c0_i32_64 = arith.constant 0 : i32
      %56 = arith.addi %55, %c0_i32_64 : i32
      %57 = arith.index_cast %56 : i32 to index
      %c2 = arith.constant 2 : index
      %c0_65 = arith.constant 0 : index
      %58 = tpu.strided_load %arg12[%57, %c2, %c0_65] {strides = array<i32: 1, 2, 1>} : memref<16x16x64xf32, #tpu.memory_space<vmem>>, vector<1x7x64xf32>
      %59 = vector.shape_cast %58 : vector<1x7x64xf32> to vector<7x64xf32>
      %60 = arith.truncf %59 : vector<7x64xf32> to vector<7x64xbf16>
      %c2_66 = arith.constant 2 : index
      %c0_67 = arith.constant 0 : index
      %c0_68 = arith.constant 0 : index
      %61 = vector.load %arg6[%c2_66, %c0_67, %c0_68] : memref<9x64x64xbf16, #tpu.memory_space<vmem>>, vector<1x64x64xbf16>
      %62 = vector.shape_cast %61 : vector<1x64x64xbf16> to vector<64x64xbf16>
      %cst_69 = arith.constant dense<0.000000e+00> : vector<7x64xf32>
      %63 = tpu.matmul %60, %62, %cst_69 {dimension_numbers = #tpu.dot_dimension_numbers<[1], [0], [0], [1], [0, 0, 1, 1], [], []>} : vector<7x64xbf16>, vector<64x64xbf16>, vector<7x64xf32> -> vector<7x64xf32>
      %64 = arith.addf %54, %63 : vector<7x64xf32>
      %c2_i32_70 = arith.constant 2 : i32
      %65 = arith.muli %c2_i32_70, %arg14 : i32
      %c1_i32_71 = arith.constant 1 : i32
      %66 = arith.addi %65, %c1_i32_71 : i32
      %67 = arith.index_cast %66 : i32 to index
      %c0_72 = arith.constant 0 : index
      %c0_73 = arith.constant 0 : index
      %68 = tpu.strided_load %arg12[%67, %c0_72, %c0_73] {strides = array<i32: 1, 2, 1>} : memref<16x16x64xf32, #tpu.memory_space<vmem>>, vector<1x7x64xf32>
      %69 = vector.shape_cast %68 : vector<1x7x64xf32> to vector<7x64xf32>
      %70 = arith.truncf %69 : vector<7x64xf32> to vector<7x64xbf16>
      %c3 = arith.constant 3 : index
      %c0_74 = arith.constant 0 : index
      %c0_75 = arith.constant 0 : index
      %71 = vector.load %arg6[%c3, %c0_74, %c0_75] : memref<9x64x64xbf16, #tpu.memory_space<vmem>>, vector<1x64x64xbf16>
      %72 = vector.shape_cast %71 : vector<1x64x64xbf16> to vector<64x64xbf16>
      %cst_76 = arith.constant dense<0.000000e+00> : vector<7x64xf32>
      %73 = tpu.matmul %70, %72, %cst_76 {dimension_numbers = #tpu.dot_dimension_numbers<[1], [0], [0], [1], [0, 0, 1, 1], [], []>} : vector<7x64xbf16>, vector<64x64xbf16>, vector<7x64xf32> -> vector<7x64xf32>
      %74 = arith.addf %64, %73 : vector<7x64xf32>
      %c2_i32_77 = arith.constant 2 : i32
      %75 = arith.muli %c2_i32_77, %arg14 : i32
      %c1_i32_78 = arith.constant 1 : i32
      %76 = arith.addi %75, %c1_i32_78 : i32
      %77 = arith.index_cast %76 : i32 to index
      %c1_79 = arith.constant 1 : index
      %c0_80 = arith.constant 0 : index
      %78 = tpu.strided_load %arg12[%77, %c1_79, %c0_80] {strides = array<i32: 1, 2, 1>} : memref<16x16x64xf32, #tpu.memory_space<vmem>>, vector<1x7x64xf32>
      %79 = vector.shape_cast %78 : vector<1x7x64xf32> to vector<7x64xf32>
      %80 = arith.truncf %79 : vector<7x64xf32> to vector<7x64xbf16>
      %c4 = arith.constant 4 : index
      %c0_81 = arith.constant 0 : index
      %c0_82 = arith.constant 0 : index
      %81 = vector.load %arg6[%c4, %c0_81, %c0_82] : memref<9x64x64xbf16, #tpu.memory_space<vmem>>, vector<1x64x64xbf16>
      %82 = vector.shape_cast %81 : vector<1x64x64xbf16> to vector<64x64xbf16>
      %cst_83 = arith.constant dense<0.000000e+00> : vector<7x64xf32>
      %83 = tpu.matmul %80, %82, %cst_83 {dimension_numbers = #tpu.dot_dimension_numbers<[1], [0], [0], [1], [0, 0, 1, 1], [], []>} : vector<7x64xbf16>, vector<64x64xbf16>, vector<7x64xf32> -> vector<7x64xf32>
      %84 = arith.addf %74, %83 : vector<7x64xf32>
      %c2_i32_84 = arith.constant 2 : i32
      %85 = arith.muli %c2_i32_84, %arg14 : i32
      %c1_i32_85 = arith.constant 1 : i32
      %86 = arith.addi %85, %c1_i32_85 : i32
      %87 = arith.index_cast %86 : i32 to index
      %c2_86 = arith.constant 2 : index
      %c0_87 = arith.constant 0 : index
      %88 = tpu.strided_load %arg12[%87, %c2_86, %c0_87] {strides = array<i32: 1, 2, 1>} : memref<16x16x64xf32, #tpu.memory_space<vmem>>, vector<1x7x64xf32>
      %89 = vector.shape_cast %88 : vector<1x7x64xf32> to vector<7x64xf32>
      %90 = arith.truncf %89 : vector<7x64xf32> to vector<7x64xbf16>
      %c5 = arith.constant 5 : index
      %c0_88 = arith.constant 0 : index
      %c0_89 = arith.constant 0 : index
      %91 = vector.load %arg6[%c5, %c0_88, %c0_89] : memref<9x64x64xbf16, #tpu.memory_space<vmem>>, vector<1x64x64xbf16>
      %92 = vector.shape_cast %91 : vector<1x64x64xbf16> to vector<64x64xbf16>
      %cst_90 = arith.constant dense<0.000000e+00> : vector<7x64xf32>
      %93 = tpu.matmul %90, %92, %cst_90 {dimension_numbers = #tpu.dot_dimension_numbers<[1], [0], [0], [1], [0, 0, 1, 1], [], []>} : vector<7x64xbf16>, vector<64x64xbf16>, vector<7x64xf32> -> vector<7x64xf32>
      %94 = arith.addf %84, %93 : vector<7x64xf32>
      %c2_i32_91 = arith.constant 2 : i32
      %95 = arith.muli %c2_i32_91, %arg14 : i32
      %c2_i32_92 = arith.constant 2 : i32
      %96 = arith.addi %95, %c2_i32_92 : i32
      %97 = arith.index_cast %96 : i32 to index
      %c0_93 = arith.constant 0 : index
      %c0_94 = arith.constant 0 : index
      %98 = tpu.strided_load %arg12[%97, %c0_93, %c0_94] {strides = array<i32: 1, 2, 1>} : memref<16x16x64xf32, #tpu.memory_space<vmem>>, vector<1x7x64xf32>
      %99 = vector.shape_cast %98 : vector<1x7x64xf32> to vector<7x64xf32>
      %100 = arith.truncf %99 : vector<7x64xf32> to vector<7x64xbf16>
      %c6 = arith.constant 6 : index
      %c0_95 = arith.constant 0 : index
      %c0_96 = arith.constant 0 : index
      %101 = vector.load %arg6[%c6, %c0_95, %c0_96] : memref<9x64x64xbf16, #tpu.memory_space<vmem>>, vector<1x64x64xbf16>
      %102 = vector.shape_cast %101 : vector<1x64x64xbf16> to vector<64x64xbf16>
      %cst_97 = arith.constant dense<0.000000e+00> : vector<7x64xf32>
      %103 = tpu.matmul %100, %102, %cst_97 {dimension_numbers = #tpu.dot_dimension_numbers<[1], [0], [0], [1], [0, 0, 1, 1], [], []>} : vector<7x64xbf16>, vector<64x64xbf16>, vector<7x64xf32> -> vector<7x64xf32>
      %104 = arith.addf %94, %103 : vector<7x64xf32>
      %c2_i32_98 = arith.constant 2 : i32
      %105 = arith.muli %c2_i32_98, %arg14 : i32
      %c2_i32_99 = arith.constant 2 : i32
      %106 = arith.addi %105, %c2_i32_99 : i32
      %107 = arith.index_cast %106 : i32 to index
      %c1_100 = arith.constant 1 : index
      %c0_101 = arith.constant 0 : index
      %108 = tpu.strided_load %arg12[%107, %c1_100, %c0_101] {strides = array<i32: 1, 2, 1>} : memref<16x16x64xf32, #tpu.memory_space<vmem>>, vector<1x7x64xf32>
      %109 = vector.shape_cast %108 : vector<1x7x64xf32> to vector<7x64xf32>
      %110 = arith.truncf %109 : vector<7x64xf32> to vector<7x64xbf16>
      %c7 = arith.constant 7 : index
      %c0_102 = arith.constant 0 : index
      %c0_103 = arith.constant 0 : index
      %111 = vector.load %arg6[%c7, %c0_102, %c0_103] : memref<9x64x64xbf16, #tpu.memory_space<vmem>>, vector<1x64x64xbf16>
      %112 = vector.shape_cast %111 : vector<1x64x64xbf16> to vector<64x64xbf16>
      %cst_104 = arith.constant dense<0.000000e+00> : vector<7x64xf32>
      %113 = tpu.matmul %110, %112, %cst_104 {dimension_numbers = #tpu.dot_dimension_numbers<[1], [0], [0], [1], [0, 0, 1, 1], [], []>} : vector<7x64xbf16>, vector<64x64xbf16>, vector<7x64xf32> -> vector<7x64xf32>
      %114 = arith.addf %104, %113 : vector<7x64xf32>
      %c2_i32_105 = arith.constant 2 : i32
      %115 = arith.muli %c2_i32_105, %arg14 : i32
      %c2_i32_106 = arith.constant 2 : i32
      %116 = arith.addi %115, %c2_i32_106 : i32
      %117 = arith.index_cast %116 : i32 to index
      %c2_107 = arith.constant 2 : index
      %c0_108 = arith.constant 0 : index
      %118 = tpu.strided_load %arg12[%117, %c2_107, %c0_108] {strides = array<i32: 1, 2, 1>} : memref<16x16x64xf32, #tpu.memory_space<vmem>>, vector<1x7x64xf32>
      %119 = vector.shape_cast %118 : vector<1x7x64xf32> to vector<7x64xf32>
      %120 = arith.truncf %119 : vector<7x64xf32> to vector<7x64xbf16>
      %c8_109 = arith.constant 8 : index
      %c0_110 = arith.constant 0 : index
      %c0_111 = arith.constant 0 : index
      %121 = vector.load %arg6[%c8_109, %c0_110, %c0_111] : memref<9x64x64xbf16, #tpu.memory_space<vmem>>, vector<1x64x64xbf16>
      %122 = vector.shape_cast %121 : vector<1x64x64xbf16> to vector<64x64xbf16>
      %cst_112 = arith.constant dense<0.000000e+00> : vector<7x64xf32>
      %123 = tpu.matmul %120, %122, %cst_112 {dimension_numbers = #tpu.dot_dimension_numbers<[1], [0], [0], [1], [0, 0, 1, 1], [], []>} : vector<7x64xbf16>, vector<64x64xbf16>, vector<7x64xf32> -> vector<7x64xf32>
      %124 = arith.addf %114, %123 : vector<7x64xf32>
      %c0_113 = arith.constant 0 : index
      %c0_114 = arith.constant 0 : index
      %125 = vector.load %arg7[%c0_113, %c0_114] : memref<1x64xf32, #tpu.memory_space<vmem>>, vector<1x64xf32>
      %126 = vector.broadcast %125 : vector<1x64xf32> to vector<7x64xf32>
      %127 = arith.addf %124, %126 : vector<7x64xf32>
      %cst_115 = arith.constant 0.000000e+00 : f32
      %128 = vector.broadcast %cst_115 : f32 to vector<7x64xf32>
      %129 = arith.cmpf ogt, %127, %128 : vector<7x64xf32>
      %cst_116 = arith.constant 0.00999999977 : f32
      %130 = vector.broadcast %cst_116 : f32 to vector<7x64xf32>
      %131 = arith.mulf %130, %127 : vector<7x64xf32>
      %132 = arith.select %129, %127, %131 : vector<7x64xi1>, vector<7x64xf32>
      %c1_i32_117 = arith.constant 1 : i32
      %133 = arith.addi %arg14, %c1_i32_117 : i32
      %134 = arith.index_cast %133 : i32 to index
      %c1_118 = arith.constant 1 : index
      %c0_119 = arith.constant 0 : index
      %135 = vector.load %arg13[%134, %c1_118, %c0_119] : memref<9x9x64xf32, #tpu.memory_space<vmem>>, vector<1x7x64xf32>
      %136 = vector.shape_cast %135 : vector<1x7x64xf32> to vector<7x64xf32>
      %137 = vector.shape_cast %132 : vector<7x64xf32> to vector<1x7x64xf32>
      tpu.vector_store %arg13[%134, %c1_118, %c0_119], %137 {strides = array<i32>} : memref<9x9x64xf32, #tpu.memory_space<vmem>>, vector<1x7x64xf32>,
    }
    %c7_i32_43 = arith.constant 7 : i32
    %c0_i32_44 = arith.constant 0 : i32
    %c7_i32_45 = arith.constant 7 : i32
    %33 = arith.addi %c0_i32_44, %c7_i32_45 : i32
    %c1_i32_46 = arith.constant 1 : i32
    scf.for %arg14 = %c0_i32_44 to %33 step %c1_i32_46  : i32 {
      %cst_48 = arith.constant 0.000000e+00 : f32
      %34 = vector.broadcast %cst_48 : f32 to vector<7x64xf32>
      %c0_i32_49 = arith.constant 0 : i32
      %35 = arith.addi %arg14, %c0_i32_49 : i32
      %36 = arith.index_cast %35 : i32 to index
      %c0_50 = arith.constant 0 : index
      %c0_51 = arith.constant 0 : index
      %37 = vector.load %arg13[%36, %c0_50, %c0_51] : memref<9x9x64xf32, #tpu.memory_space<vmem>>, vector<1x7x64xf32>
      %38 = vector.shape_cast %37 : vector<1x7x64xf32> to vector<7x64xf32>
      %39 = arith.truncf %38 : vector<7x64xf32> to vector<7x64xbf16>
      %c0_52 = arith.constant 0 : index
      %c0_53 = arith.constant 0 : index
      %c0_54 = arith.constant 0 : index
      %40 = vector.load %arg8[%c0_52, %c0_53, %c0_54] : memref<9x64x64xbf16, #tpu.memory_space<vmem>>, vector<1x64x64xbf16>
      %41 = vector.shape_cast %40 : vector<1x64x64xbf16> to vector<64x64xbf16>
      %cst_55 = arith.constant dense<0.000000e+00> : vector<7x64xf32>
      %42 = tpu.matmul %39, %41, %cst_55 {dimension_numbers = #tpu.dot_dimension_numbers<[1], [0], [0], [1], [0, 0, 1, 1], [], []>} : vector<7x64xbf16>, vector<64x64xbf16>, vector<7x64xf32> -> vector<7x64xf32>
      %43 = arith.addf %34, %42 : vector<7x64xf32>
      %c0_i32_56 = arith.constant 0 : i32
      %44 = arith.addi %arg14, %c0_i32_56 : i32
      %45 = arith.index_cast %44 : i32 to index
      %c1 = arith.constant 1 : index
      %c0_57 = arith.constant 0 : index
      %46 = vector.load %arg13[%45, %c1, %c0_57] : memref<9x9x64xf32, #tpu.memory_space<vmem>>, vector<1x7x64xf32>
      %47 = vector.shape_cast %46 : vector<1x7x64xf32> to vector<7x64xf32>
      %48 = arith.truncf %47 : vector<7x64xf32> to vector<7x64xbf16>
      %c1_58 = arith.constant 1 : index
      %c0_59 = arith.constant 0 : index
      %c0_60 = arith.constant 0 : index
      %49 = vector.load %arg8[%c1_58, %c0_59, %c0_60] : memref<9x64x64xbf16, #tpu.memory_space<vmem>>, vector<1x64x64xbf16>
      %50 = vector.shape_cast %49 : vector<1x64x64xbf16> to vector<64x64xbf16>
      %cst_61 = arith.constant dense<0.000000e+00> : vector<7x64xf32>
      %51 = tpu.matmul %48, %50, %cst_61 {dimension_numbers = #tpu.dot_dimension_numbers<[1], [0], [0], [1], [0, 0, 1, 1], [], []>} : vector<7x64xbf16>, vector<64x64xbf16>, vector<7x64xf32> -> vector<7x64xf32>
      %52 = arith.addf %43, %51 : vector<7x64xf32>
      %c0_i32_62 = arith.constant 0 : i32
      %53 = arith.addi %arg14, %c0_i32_62 : i32
      %54 = arith.index_cast %53 : i32 to index
      %c2 = arith.constant 2 : index
      %c0_63 = arith.constant 0 : index
      %55 = vector.load %arg13[%54, %c2, %c0_63] : memref<9x9x64xf32, #tpu.memory_space<vmem>>, vector<1x7x64xf32>
      %56 = vector.shape_cast %55 : vector<1x7x64xf32> to vector<7x64xf32>
      %57 = arith.truncf %56 : vector<7x64xf32> to vector<7x64xbf16>
      %c2_64 = arith.constant 2 : index
      %c0_65 = arith.constant 0 : index
      %c0_66 = arith.constant 0 : index
      %58 = vector.load %arg8[%c2_64, %c0_65, %c0_66] : memref<9x64x64xbf16, #tpu.memory_space<vmem>>, vector<1x64x64xbf16>
      %59 = vector.shape_cast %58 : vector<1x64x64xbf16> to vector<64x64xbf16>
      %cst_67 = arith.constant dense<0.000000e+00> : vector<7x64xf32>
      %60 = tpu.matmul %57, %59, %cst_67 {dimension_numbers = #tpu.dot_dimension_numbers<[1], [0], [0], [1], [0, 0, 1, 1], [], []>} : vector<7x64xbf16>, vector<64x64xbf16>, vector<7x64xf32> -> vector<7x64xf32>
      %61 = arith.addf %52, %60 : vector<7x64xf32>
      %c1_i32_68 = arith.constant 1 : i32
      %62 = arith.addi %arg14, %c1_i32_68 : i32
      %63 = arith.index_cast %62 : i32 to index
      %c0_69 = arith.constant 0 : index
      %c0_70 = arith.constant 0 : index
      %64 = vector.load %arg13[%63, %c0_69, %c0_70] : memref<9x9x64xf32, #tpu.memory_space<vmem>>, vector<1x7x64xf32>
      %65 = vector.shape_cast %64 : vector<1x7x64xf32> to vector<7x64xf32>
      %66 = arith.truncf %65 : vector<7x64xf32> to vector<7x64xbf16>
      %c3 = arith.constant 3 : index
      %c0_71 = arith.constant 0 : index
      %c0_72 = arith.constant 0 : index
      %67 = vector.load %arg8[%c3, %c0_71, %c0_72] : memref<9x64x64xbf16, #tpu.memory_space<vmem>>, vector<1x64x64xbf16>
      %68 = vector.shape_cast %67 : vector<1x64x64xbf16> to vector<64x64xbf16>
      %cst_73 = arith.constant dense<0.000000e+00> : vector<7x64xf32>
      %69 = tpu.matmul %66, %68, %cst_73 {dimension_numbers = #tpu.dot_dimension_numbers<[1], [0], [0], [1], [0, 0, 1, 1], [], []>} : vector<7x64xbf16>, vector<64x64xbf16>, vector<7x64xf32> -> vector<7x64xf32>
      %70 = arith.addf %61, %69 : vector<7x64xf32>
      %c1_i32_74 = arith.constant 1 : i32
      %71 = arith.addi %arg14, %c1_i32_74 : i32
      %72 = arith.index_cast %71 : i32 to index
      %c1_75 = arith.constant 1 : index
      %c0_76 = arith.constant 0 : index
      %73 = vector.load %arg13[%72, %c1_75, %c0_76] : memref<9x9x64xf32, #tpu.memory_space<vmem>>, vector<1x7x64xf32>
      %74 = vector.shape_cast %73 : vector<1x7x64xf32> to vector<7x64xf32>
      %75 = arith.truncf %74 : vector<7x64xf32> to vector<7x64xbf16>
      %c4 = arith.constant 4 : index
      %c0_77 = arith.constant 0 : index
      %c0_78 = arith.constant 0 : index
      %76 = vector.load %arg8[%c4, %c0_77, %c0_78] : memref<9x64x64xbf16, #tpu.memory_space<vmem>>, vector<1x64x64xbf16>
      %77 = vector.shape_cast %76 : vector<1x64x64xbf16> to vector<64x64xbf16>
      %cst_79 = arith.constant dense<0.000000e+00> : vector<7x64xf32>
      %78 = tpu.matmul %75, %77, %cst_79 {dimension_numbers = #tpu.dot_dimension_numbers<[1], [0], [0], [1], [0, 0, 1, 1], [], []>} : vector<7x64xbf16>, vector<64x64xbf16>, vector<7x64xf32> -> vector<7x64xf32>
      %79 = arith.addf %70, %78 : vector<7x64xf32>
      %c1_i32_80 = arith.constant 1 : i32
      %80 = arith.addi %arg14, %c1_i32_80 : i32
      %81 = arith.index_cast %80 : i32 to index
      %c2_81 = arith.constant 2 : index
      %c0_82 = arith.constant 0 : index
      %82 = vector.load %arg13[%81, %c2_81, %c0_82] : memref<9x9x64xf32, #tpu.memory_space<vmem>>, vector<1x7x64xf32>
      %83 = vector.shape_cast %82 : vector<1x7x64xf32> to vector<7x64xf32>
      %84 = arith.truncf %83 : vector<7x64xf32> to vector<7x64xbf16>
      %c5 = arith.constant 5 : index
      %c0_83 = arith.constant 0 : index
      %c0_84 = arith.constant 0 : index
      %85 = vector.load %arg8[%c5, %c0_83, %c0_84] : memref<9x64x64xbf16, #tpu.memory_space<vmem>>, vector<1x64x64xbf16>
      %86 = vector.shape_cast %85 : vector<1x64x64xbf16> to vector<64x64xbf16>
      %cst_85 = arith.constant dense<0.000000e+00> : vector<7x64xf32>
      %87 = tpu.matmul %84, %86, %cst_85 {dimension_numbers = #tpu.dot_dimension_numbers<[1], [0], [0], [1], [0, 0, 1, 1], [], []>} : vector<7x64xbf16>, vector<64x64xbf16>, vector<7x64xf32> -> vector<7x64xf32>
      %88 = arith.addf %79, %87 : vector<7x64xf32>
      %c2_i32 = arith.constant 2 : i32
      %89 = arith.addi %arg14, %c2_i32 : i32
      %90 = arith.index_cast %89 : i32 to index
      %c0_86 = arith.constant 0 : index
      %c0_87 = arith.constant 0 : index
      %91 = vector.load %arg13[%90, %c0_86, %c0_87] : memref<9x9x64xf32, #tpu.memory_space<vmem>>, vector<1x7x64xf32>
      %92 = vector.shape_cast %91 : vector<1x7x64xf32> to vector<7x64xf32>
      %93 = arith.truncf %92 : vector<7x64xf32> to vector<7x64xbf16>
      %c6 = arith.constant 6 : index
      %c0_88 = arith.constant 0 : index
      %c0_89 = arith.constant 0 : index
      %94 = vector.load %arg8[%c6, %c0_88, %c0_89] : memref<9x64x64xbf16, #tpu.memory_space<vmem>>, vector<1x64x64xbf16>
      %95 = vector.shape_cast %94 : vector<1x64x64xbf16> to vector<64x64xbf16>
      %cst_90 = arith.constant dense<0.000000e+00> : vector<7x64xf32>
      %96 = tpu.matmul %93, %95, %cst_90 {dimension_numbers = #tpu.dot_dimension_numbers<[1], [0], [0], [1], [0, 0, 1, 1], [], []>} : vector<7x64xbf16>, vector<64x64xbf16>, vector<7x64xf32> -> vector<7x64xf32>
      %97 = arith.addf %88, %96 : vector<7x64xf32>
      %c2_i32_91 = arith.constant 2 : i32
      %98 = arith.addi %arg14, %c2_i32_91 : i32
      %99 = arith.index_cast %98 : i32 to index
      %c1_92 = arith.constant 1 : index
      %c0_93 = arith.constant 0 : index
      %100 = vector.load %arg13[%99, %c1_92, %c0_93] : memref<9x9x64xf32, #tpu.memory_space<vmem>>, vector<1x7x64xf32>
      %101 = vector.shape_cast %100 : vector<1x7x64xf32> to vector<7x64xf32>
      %102 = arith.truncf %101 : vector<7x64xf32> to vector<7x64xbf16>
      %c7 = arith.constant 7 : index
      %c0_94 = arith.constant 0 : index
      %c0_95 = arith.constant 0 : index
      %103 = vector.load %arg8[%c7, %c0_94, %c0_95] : memref<9x64x64xbf16, #tpu.memory_space<vmem>>, vector<1x64x64xbf16>
      %104 = vector.shape_cast %103 : vector<1x64x64xbf16> to vector<64x64xbf16>
      %cst_96 = arith.constant dense<0.000000e+00> : vector<7x64xf32>
      %105 = tpu.matmul %102, %104, %cst_96 {dimension_numbers = #tpu.dot_dimension_numbers<[1], [0], [0], [1], [0, 0, 1, 1], [], []>} : vector<7x64xbf16>, vector<64x64xbf16>, vector<7x64xf32> -> vector<7x64xf32>
      %106 = arith.addf %97, %105 : vector<7x64xf32>
      %c2_i32_97 = arith.constant 2 : i32
      %107 = arith.addi %arg14, %c2_i32_97 : i32
      %108 = arith.index_cast %107 : i32 to index
      %c2_98 = arith.constant 2 : index
      %c0_99 = arith.constant 0 : index
      %109 = vector.load %arg13[%108, %c2_98, %c0_99] : memref<9x9x64xf32, #tpu.memory_space<vmem>>, vector<1x7x64xf32>
      %110 = vector.shape_cast %109 : vector<1x7x64xf32> to vector<7x64xf32>
      %111 = arith.truncf %110 : vector<7x64xf32> to vector<7x64xbf16>
      %c8_100 = arith.constant 8 : index
      %c0_101 = arith.constant 0 : index
      %c0_102 = arith.constant 0 : index
      %112 = vector.load %arg8[%c8_100, %c0_101, %c0_102] : memref<9x64x64xbf16, #tpu.memory_space<vmem>>, vector<1x64x64xbf16>
      %113 = vector.shape_cast %112 : vector<1x64x64xbf16> to vector<64x64xbf16>
      %cst_103 = arith.constant dense<0.000000e+00> : vector<7x64xf32>
      %114 = tpu.matmul %111, %113, %cst_103 {dimension_numbers = #tpu.dot_dimension_numbers<[1], [0], [0], [1], [0, 0, 1, 1], [], []>} : vector<7x64xbf16>, vector<64x64xbf16>, vector<7x64xf32> -> vector<7x64xf32>
      %115 = arith.addf %106, %114 : vector<7x64xf32>
      %c0_104 = arith.constant 0 : index
      %c0_105 = arith.constant 0 : index
      %116 = vector.load %arg9[%c0_104, %c0_105] : memref<1x64xf32, #tpu.memory_space<vmem>>, vector<1x64xf32>
      %117 = vector.broadcast %116 : vector<1x64xf32> to vector<7x64xf32>
      %118 = arith.addf %115, %117 : vector<7x64xf32>
      %cst_106 = arith.constant 0.000000e+00 : f32
      %119 = vector.broadcast %cst_106 : f32 to vector<7x64xf32>
      %120 = arith.cmpf ogt, %118, %119 : vector<7x64xf32>
      %cst_107 = arith.constant 0.00999999977 : f32
      %121 = vector.broadcast %cst_107 : f32 to vector<7x64xf32>
      %122 = arith.mulf %121, %118 : vector<7x64xf32>
      %123 = arith.select %120, %118, %122 : vector<7x64xi1>, vector<7x64xf32>
      %c0_108 = arith.constant 0 : index
      %124 = arith.index_cast %arg14 : i32 to index
      %c0_109 = arith.constant 0 : index
      %c0_110 = arith.constant 0 : index
      %125 = vector.load %arg10[%c0_108, %124, %c0_109, %c0_110] : memref<1x7x7x64xf32, #tpu.memory_space<vmem>>, vector<1x1x7x64xf32>
      %126 = vector.shape_cast %125 : vector<1x1x7x64xf32> to vector<7x64xf32>
      %127 = vector.shape_cast %123 : vector<7x64xf32> to vector<1x1x7x64xf32>
      tpu.vector_store %arg10[%c0_108, %124, %c0_109, %c0_110], %127 {strides = array<i32>} : memref<1x7x7x64xf32, #tpu.memory_space<vmem>>, vector<1x1x7x64xf32>,
    }
    %c7_i32_47 = arith.constant 7 : i32
    return
  }
  func.func @transform_0(%arg0: i32) -> (i32, i32, i32, i32) {
    %c0_i32 = arith.constant 0 : i32
    %c0_i32_0 = arith.constant 0 : i32
    %c0_i32_1 = arith.constant 0 : i32
    %c0_i32_2 = arith.constant 0 : i32
    return %arg0, %c0_i32, %c0_i32_0, %c0_i32_1 : i32, i32, i32, i32
  }
  func.func @transform_1(%arg0: i32) -> (i32, i32) {
    %c0_i32 = arith.constant 0 : i32
    %c0_i32_0 = arith.constant 0 : i32
    %c0_i32_1 = arith.constant 0 : i32
    return %c0_i32, %c0_i32_0 : i32, i32
  }
  func.func @transform_2(%arg0: i32) -> (i32, i32) {
    %c0_i32 = arith.constant 0 : i32
    %c0_i32_0 = arith.constant 0 : i32
    %c0_i32_1 = arith.constant 0 : i32
    return %c0_i32, %c0_i32_0 : i32, i32
  }
  func.func @transform_3(%arg0: i32) -> (i32, i32, i32) {
    %c0_i32 = arith.constant 0 : i32
    %c0_i32_0 = arith.constant 0 : i32
    %c0_i32_1 = arith.constant 0 : i32
    %c0_i32_2 = arith.constant 0 : i32
    return %c0_i32, %c0_i32_0, %c0_i32_1 : i32, i32, i32
  }
  func.func @transform_4(%arg0: i32) -> (i32, i32) {
    %c0_i32 = arith.constant 0 : i32
    %c0_i32_0 = arith.constant 0 : i32
    %c0_i32_1 = arith.constant 0 : i32
    return %c0_i32, %c0_i32_0 : i32, i32
  }
  func.func @transform_5(%arg0: i32) -> (i32, i32, i32) {
    %c0_i32 = arith.constant 0 : i32
    %c0_i32_0 = arith.constant 0 : i32
    %c0_i32_1 = arith.constant 0 : i32
    %c0_i32_2 = arith.constant 0 : i32
    return %c0_i32, %c0_i32_0, %c0_i32_1 : i32, i32, i32
  }
  func.func @transform_6(%arg0: i32) -> (i32, i32) {
    %c0_i32 = arith.constant 0 : i32
    %c0_i32_0 = arith.constant 0 : i32
    %c0_i32_1 = arith.constant 0 : i32
    return %c0_i32, %c0_i32_0 : i32, i32
  }
  func.func @transform_7(%arg0: i32) -> (i32, i32, i32) {
    %c0_i32 = arith.constant 0 : i32
    %c0_i32_0 = arith.constant 0 : i32
    %c0_i32_1 = arith.constant 0 : i32
    %c0_i32_2 = arith.constant 0 : i32
    return %c0_i32, %c0_i32_0, %c0_i32_1 : i32, i32, i32
  }
  func.func @transform_8(%arg0: i32) -> (i32, i32) {
    %c0_i32 = arith.constant 0 : i32
    %c0_i32_0 = arith.constant 0 : i32
    %c0_i32_1 = arith.constant 0 : i32
    return %c0_i32, %c0_i32_0 : i32, i32
  }
  func.func @transform_9(%arg0: i32) -> (i32, i32, i32, i32) {
    %c0_i32 = arith.constant 0 : i32
    %c0_i32_0 = arith.constant 0 : i32
    %c0_i32_1 = arith.constant 0 : i32
    %c0_i32_2 = arith.constant 0 : i32
    return %arg0, %c0_i32, %c0_i32_0, %c0_i32_1 : i32, i32, i32, i32
  }
}

</mosaic_0001>

<bundles_post_ra>
// kernel: encoder_forward.1
= control target key start
LH: loop header
LB: loop body
LE: loop exit
PB: predicated region body
PF: predicated region fallthrough
CT: control target
= control target key end

     0   :  { %s3037_s30 = smov 0   ;;  %s3829_s0 = inlined_call_operand.vmem [shape: f32[2,30,30,32], index: 0, kind: input, shape index: {}]   ;;  %s3830_s1 = inlined_call_operand.vmem [shape: f32[9,32], index: 1, kind: input, shape index: {}]   ;;  %s3831_s2 = inlined_call_operand.vmem [shape: f32[1,32], index: 2, kind: input, shape index: {}]   ;;  %s3832_s3 = inlined_call_operand.vmem [shape: bf16[9,32,64], index: 3, kind: input, shape index: {}]   ;;  %s3833_s4 = inlined_call_operand.vmem [shape: f32[1,64], index: 4, kind: input, shape index: {}]   ;;  %s3834_s5 = inlined_call_operand.vmem [shape: bf16[9,64,64], index: 5, kind: input, shape index: {}]   ;;  %s3835_s6 = inlined_call_operand.vmem [shape: f32[1,64], index: 6, kind: input, shape index: {}]   ;;  %s3836_s7 = inlined_call_operand.vmem [shape: bf16[9,64,64], index: 7, kind: input, shape index: {}]   ;;  %s3837_s8 = inlined_call_operand.vmem [shape: f32[1,64], index: 8, kind: input, shape index: {}]   ;;  %s3838_s9 = inlined_call_operand.vmem [shape: f32[2,7,7,64], index: 9, kind: output, shape index: {}]  }
   0x1 LB: > { %s2154_s10 = sadd.s32 4294967295, %s2968_s30   ;;  %p2158_p0 = scmp.ge.s32.totalorder %s2968_s30, 1  ;;  %s2968_s30 = sphi %s3037_s30, %s19_s30  }
   0x2   : > { %p287_p1 = scmp.lt.s32.totalorder %s2968_s30, 3 }
   0x4   : > { %p288_p2 = pnand %p2158_p0, %p287_p1 }
   0x5   : > { %p323_p3 = scmp.lt.s32.totalorder (!%p288_p2), %s2154_s10, 1  ;;  %s3305_s19 = smov (!%p288_p2), 0  }
   0x6   : > { %291 = sbr.rel (%p288_p2) target bundleno = 722 (0x2d2), region = 56 }
   0xb   : > { %vm334_vm0 = vcmask 261120   ;;  %v2986_v0 = vmov 0.0   ;;  %s3840_s10 = smov (!%p323_p3, %s2154_s10), 1  ;;  %vm338_vm1 = vcmask 259072   ;;  %vm406_vm2 = vcmask 523264  }
   0xc   : > { %335 = vst.msk [vmem:[#allocation2] sm:$0xff] %vm334_vm0, %v2986_v0  ;;  %s2890_s11 = smul.u32 960, %s3840_s10  ;;  %vm412_vm3 = vcmask 516096   ;;  %vm345_vm4 = vcmask 253952  }
   0xd   : > { %336 = vst.msk [vmem:[#allocation2 + $0x8] sm:$0xff] %vm334_vm0, %v2986_v0  ;;  %s2891_s12 = smul.u32 56, %s3840_s10 }
   0xe   : > { %337 = vst.msk [vmem:[#allocation2 + $0x10] sm:$0xff] %vm334_vm0, %v2986_v0  ;;  %s3058_s15 = scalar_lea.vmem %s3829_s0, %s2890_s11 }
   0xf   : > { %341 = vst.msk [vmem:[#allocation2 + $0x3a0] sm:$0xff] %vm334_vm0, %v2986_v0  ;;  %s3065_s18 = scalar_lea.vmem %s3838_s9, %s2891_s12 }
  0x10   : > { %342 = vst.msk [vmem:[#allocation2 + $0x3a8] sm:$0xff] %vm334_vm0, %v2986_v0 }
  0x11   : > { %343 = vst.msk [vmem:[#allocation2 + $0x3b0] sm:$0xff] %vm334_vm0, %v2986_v0 }
  0x12   : > { %339 = vst.msk [vmem:[#allocation2 + $0x18] sm:$0x3f] %vm338_vm1, %v2986_v0 }
  0x13   : > { %344 = vst.msk [vmem:[#allocation2 + $0x3b8] sm:$0x3f] %vm338_vm1, %v2986_v0 }
  0x14   : > { %407 = vst.msk [vmem:[#allocation3] sm:$0xff] %vm406_vm2, %v2986_v0 }
  0x15   : > { %408 = vst.msk [vmem:[#allocation3 + $0x8] sm:$0xff] %vm406_vm2, %v2986_v0 }
  0x16   : > { %410 = vst.msk [vmem:[#allocation3 + $0xf0] sm:$0xff] %vm406_vm2, %v2986_v0 }
  0x17   : > { %411 = vst.msk [vmem:[#allocation3 + $0xf8] sm:$0xff] %vm406_vm2, %v2986_v0 }
  0x18   : > { %445 = vst.msk [vmem:[#allocation4] sm:$0xff] %vm406_vm2, %v2986_v0 }
  0x19   : > { %448 = vst.msk [vmem:[#allocation4 + $0x80] sm:$0xff] %vm406_vm2, %v2986_v0 }
  0x1a   : > { %446 = vst.msk [vmem:[#allocation4 + $0x8] sm:$0x1] %vm412_vm3, %v2986_v0 }
  0x1b   : > { %413 = vst.msk [vmem:[#allocation3] sm:$0x1] %vm412_vm3, %v2986_v0 }
  0x1c   : > { %414 = vst.msk [vmem:[#allocation3 + $0x10] sm:$0x1] %vm412_vm3, %v2986_v0 }
  0x1d   : > { %415 = vst.msk [vmem:[#allocation3 + $0x20] sm:$0x1] %vm412_vm3, %v2986_v0 }
  0x1e   : > { %416 = vst.msk [vmem:[#allocation3 + $0x30] sm:$0x1] %vm412_vm3, %v2986_v0 }
  0x1f   : > { %417 = vst.msk [vmem:[#allocation3 + $0x40] sm:$0x1] %vm412_vm3, %v2986_v0 }
  0x20   : > { %418 = vst.msk [vmem:[#allocation3 + $0x50] sm:$0x1] %vm412_vm3, %v2986_v0 }
  0x21   : > { %419 = vst.msk [vmem:[#allocation3 + $0x60] sm:$0x1] %vm412_vm3, %v2986_v0 }
  0x22   : > { %420 = vst.msk [vmem:[#allocation3 + $0x70] sm:$0x1] %vm412_vm3, %v2986_v0 }
  0x23   : > { %421 = vst.msk [vmem:[#allocation3 + $0x80] sm:$0x1] %vm412_vm3, %v2986_v0 }
  0x24   : > { %422 = vst.msk [vmem:[#allocation3 + $0x90] sm:$0x1] %vm412_vm3, %v2986_v0 }
  0x25   : > { %423 = vst.msk [vmem:[#allocation3 + $0xa0] sm:$0x1] %vm412_vm3, %v2986_v0 }
  0x26   : > { %424 = vst.msk [vmem:[#allocation3 + $0xb0] sm:$0x1] %vm412_vm3, %v2986_v0 }
  0x27   : > { %425 = vst.msk [vmem:[#allocation3 + $0xc0] sm:$0x1] %vm412_vm3, %v2986_v0 }
  0x28   : > { %426 = vst.msk [vmem:[#allocation3 + $0xd0] sm:$0x1] %vm412_vm3, %v2986_v0 }
  0x29   : > { %427 = vst.msk [vmem:[#allocation3 + $0xe0] sm:$0x1] %vm412_vm3, %v2986_v0 }
  0x2a   : > { %428 = vst.msk [vmem:[#allocation3 + $0xf0] sm:$0x1] %vm412_vm3, %v2986_v0 }
  0x2b   : > { %429 = vst.msk [vmem:[#allocation3 + $0xf] sm:$0x1] %vm412_vm3, %v2986_v0 }
  0x2c   : > { %430 = vst.msk [vmem:[#allocation3 + $0x1f] sm:$0x1] %vm412_vm3, %v2986_v0 }
  0x2d   : > { %431 = vst.msk [vmem:[#allocation3 + $0x2f] sm:$0x1] %vm412_vm3, %v2986_v0 }
  0x2e   : > { %432 = vst.msk [vmem:[#allocation3 + $0x3f] sm:$0x1] %vm412_vm3, %v2986_v0 }
  0x2f   : > { %433 = vst.msk [vmem:[#allocation3 + $0x4f] sm:$0x1] %vm412_vm3, %v2986_v0 }
  0x30   : > { %434 = vst.msk [vmem:[#allocation3 + $0x5f] sm:$0x1] %vm412_vm3, %v2986_v0 }
  0x31   : > { %435 = vst.msk [vmem:[#allocation3 + $0x6f] sm:$0x1] %vm412_vm3, %v2986_v0 }
  0x32   : > { %436 = vst.msk [vmem:[#allocation3 + $0x7f] sm:$0x1] %vm412_vm3, %v2986_v0 }
  0x33   : > { %437 = vst.msk [vmem:[#allocation3 + $0x8f] sm:$0x1] %vm412_vm3, %v2986_v0 }
  0x34   : > { %438 = vst.msk [vmem:[#allocation3 + $0x9f] sm:$0x1] %vm412_vm3, %v2986_v0 }
  0x35   : > { %439 = vst.msk [vmem:[#allocation3 + $0xaf] sm:$0x1] %vm412_vm3, %v2986_v0 }
  0x36   : > { %440 = vst.msk [vmem:[#allocation3 + $0xbf] sm:$0x1] %vm412_vm3, %v2986_v0 }
  0x37   : > { %441 = vst.msk [vmem:[#allocation3 + $0xcf] sm:$0x1] %vm412_vm3, %v2986_v0 }
  0x38   : > { %442 = vst.msk [vmem:[#allocation3 + $0xdf] sm:$0x1] %vm412_vm3, %v2986_v0 }
  0x39   : > { %443 = vst.msk [vmem:[#allocation3 + $0xef] sm:$0x1] %vm412_vm3, %v2986_v0 }
  0x3a   : > { %444 = vst.msk [vmem:[#allocation3 + $0xff] sm:$0x1] %vm412_vm3, %v2986_v0 }
  0x3b   : > { %449 = vst.msk [vmem:[#allocation4 + $0x88] sm:$0x1] %vm412_vm3, %v2986_v0 }
  0x3c   : > { %450 = vst.msk [vmem:[#allocation4] sm:$0x1] %vm412_vm3, %v2986_v0 }
  0x3d   : > { %451 = vst.msk [vmem:[#allocation4 + $0x10] sm:$0x1] %vm412_vm3, %v2986_v0 }
  0x3e   : > { %452 = vst.msk [vmem:[#allocation4 + $0x20] sm:$0x1] %vm412_vm3, %v2986_v0 }
  0x3f   : > { %453 = vst.msk [vmem:[#allocation4 + $0x30] sm:$0x1] %vm412_vm3, %v2986_v0 }
  0x40   : > { %454 = vst.msk [vmem:[#allocation4 + $0x40] sm:$0x1] %vm412_vm3, %v2986_v0 }
  0x41   : > { %455 = vst.msk [vmem:[#allocation4 + $0x50] sm:$0x1] %vm412_vm3, %v2986_v0 }
  0x42   : > { %456 = vst.msk [vmem:[#allocation4 + $0x60] sm:$0x1] %vm412_vm3, %v2986_v0 }
  0x43   : > { %457 = vst.msk [vmem:[#allocation4 + $0x70] sm:$0x1] %vm412_vm3, %v2986_v0 }
  0x44   : > { %458 = vst.msk [vmem:[#allocation4 + $0x80] sm:$0x1] %vm412_vm3, %v2986_v0 }
  0x45   : > { %459 = vst.msk [vmem:[#allocation4 + $0x8] sm:$0x1] %vm412_vm3, %v2986_v0 }
  0x46   : > { %460 = vst.msk [vmem:[#allocation4 + $0x18] sm:$0x1] %vm412_vm3, %v2986_v0 }
  0x47   : > { %461 = vst.msk [vmem:[#allocation4 + $0x28] sm:$0x1] %vm412_vm3, %v2986_v0 }
  0x48   : > { %462 = vst.msk [vmem:[#allocation4 + $0x38] sm:$0x1] %vm412_vm3, %v2986_v0 }
  0x49   : > { %463 = vst.msk [vmem:[#allocation4 + $0x48] sm:$0x1] %vm412_vm3, %v2986_v0 }
  0x4a   : > { %464 = vst.msk [vmem:[#allocation4 + $0x58] sm:$0x1] %vm412_vm3, %v2986_v0 }
  0x4b   : > { %465 = vst.msk [vmem:[#allocation4 + $0x68] sm:$0x1] %vm412_vm3, %v2986_v0 }
  0x4c   : > { %466 = vst.msk [vmem:[#allocation4 + $0x78] sm:$0x1] %vm412_vm3, %v2986_v0 }
  0x4d   : > { %467 = vst.msk [vmem:[#allocation4 + $0x88] sm:$0x1] %vm412_vm3, %v2986_v0 }
  0x4e   : > { %346 = vst.msk [vmem:[#allocation2] sm:$0x1] %vm345_vm4, %v2986_v0 }
  0x4f   : > { %347 = vst.msk [vmem:[#allocation2 + $0x20] sm:$0x1] %vm345_vm4, %v2986_v0 }
  0x50   : > { %348 = vst.msk [vmem:[#allocation2 + $0x40] sm:$0x1] %vm345_vm4, %v2986_v0 }
  0x51   : > { %349 = vst.msk [vmem:[#allocation2 + $0x60] sm:$0x1] %vm345_vm4, %v2986_v0 }
  0x52   : > { %350 = vst.msk [vmem:[#allocation2 + $0x80] sm:$0x1] %vm345_vm4, %v2986_v0 }
  0x53   : > { %351 = vst.msk [vmem:[#allocation2 + $0xa0] sm:$0x1] %vm345_vm4, %v2986_v0 }
  0x54   : > { %352 = vst.msk [vmem:[#allocation2 + $0xc0] sm:$0x1] %vm345_vm4, %v2986_v0 }
  0x55   : > { %353 = vst.msk [vmem:[#allocation2 + $0xe0] sm:$0x1] %vm345_vm4, %v2986_v0 }
  0x56   : > { %354 = vst.msk [vmem:[#allocation2 + $0x100] sm:$0x1] %vm345_vm4, %v2986_v0 }
  0x57   : > { %355 = vst.msk [vmem:[#allocation2 + $0x120] sm:$0x1] %vm345_vm4, %v2986_v0 }
  0x58   : > { %356 = vst.msk [vmem:[#allocation2 + $0x140] sm:$0x1] %vm345_vm4, %v2986_v0 }
  0x59   : > { %357 = vst.msk [vmem:[#allocation2 + $0x160] sm:$0x1] %vm345_vm4, %v2986_v0 }
  0x5a   : > { %358 = vst.msk [vmem:[#allocation2 + $0x180] sm:$0x1] %vm345_vm4, %v2986_v0 }
  0x5b   : > { %359 = vst.msk [vmem:[#allocation2 + $0x1a0] sm:$0x1] %vm345_vm4, %v2986_v0 }
  0x5c   : > { %360 = vst.msk [vmem:[#allocation2 + $0x1c0] sm:$0x1] %vm345_vm4, %v2986_v0 }
  0x5d   : > { %361 = vst.msk [vmem:[#allocation2 + $0x1e0] sm:$0x1] %vm345_vm4, %v2986_v0 }
  0x5e   : > { %362 = vst.msk [vmem:[#allocation2 + $0x200] sm:$0x1] %vm345_vm4, %v2986_v0 }
  0x5f   : > { %363 = vst.msk [vmem:[#allocation2 + $0x220] sm:$0x1] %vm345_vm4, %v2986_v0 }
  0x60   : > { %364 = vst.msk [vmem:[#allocation2 + $0x240] sm:$0x1] %vm345_vm4, %v2986_v0 }
  0x61   : > { %365 = vst.msk [vmem:[#allocation2 + $0x260] sm:$0x1] %vm345_vm4, %v2986_v0 }
  0x62   : > { %366 = vst.msk [vmem:[#allocation2 + $0x280] sm:$0x1] %vm345_vm4, %v2986_v0 }
  0x63   : > { %367 = vst.msk [vmem:[#allocation2 + $0x2a0] sm:$0x1] %vm345_vm4, %v2986_v0 }
  0x64   : > { %368 = vst.msk [vmem:[#allocation2 + $0x2c0] sm:$0x1] %vm345_vm4, %v2986_v0 }
  0x65   : > { %369 = vst.msk [vmem:[#allocation2 + $0x2e0] sm:$0x1] %vm345_vm4, %v2986_v0 }
  0x66   : > { %370 = vst.msk [vmem:[#allocation2 + $0x300] sm:$0x1] %vm345_vm4, %v2986_v0 }
  0x67   : > { %371 = vst.msk [vmem:[#allocation2 + $0x320] sm:$0x1] %vm345_vm4, %v2986_v0 }
  0x68   : > { %372 = vst.msk [vmem:[#allocation2 + $0x340] sm:$0x1] %vm345_vm4, %v2986_v0 }
  0x69   : > { %373 = vst.msk [vmem:[#allocation2 + $0x360] sm:$0x1] %vm345_vm4, %v2986_v0 }
  0x6a   : > { %374 = vst.msk [vmem:[#allocation2 + $0x380] sm:$0x1] %vm345_vm4, %v2986_v0 }
  0x6b   : > { %375 = vst.msk [vmem:[#allocation2 + $0x3a0] sm:$0x1] %vm345_vm4, %v2986_v0 }
  0x6c   : > { %376 = vst.msk [vmem:[#allocation2 + $0x1d] sm:$0x1] %vm345_vm4, %v2986_v0 }
  0x6d   : > { %377 = vst.msk [vmem:[#allocation2 + $0x3d] sm:$0x1] %vm345_vm4, %v2986_v0 }
  0x6e   : > { %378 = vst.msk [vmem:[#allocation2 + $0x5d] sm:$0x1] %vm345_vm4, %v2986_v0 }
  0x6f   : > { %379 = vst.msk [vmem:[#allocation2 + $0x7d] sm:$0x1] %vm345_vm4, %v2986_v0 }
  0x70   : > { %380 = vst.msk [vmem:[#allocation2 + $0x9d] sm:$0x1] %vm345_vm4, %v2986_v0 }
  0x71   : > { %381 = vst.msk [vmem:[#allocation2 + $0xbd] sm:$0x1] %vm345_vm4, %v2986_v0 }
  0x72   : > { %382 = vst.msk [vmem:[#allocation2 + $0xdd] sm:$0x1] %vm345_vm4, %v2986_v0 }
  0x73   : > { %383 = vst.msk [vmem:[#allocation2 + $0xfd] sm:$0x1] %vm345_vm4, %v2986_v0 }
  0x74   : > { %384 = vst.msk [vmem:[#allocation2 + $0x11d] sm:$0x1] %vm345_vm4, %v2986_v0 }
  0x75   : > { %385 = vst.msk [vmem:[#allocation2 + $0x13d] sm:$0x1] %vm345_vm4, %v2986_v0 }
  0x76   : > { %386 = vst.msk [vmem:[#allocation2 + $0x15d] sm:$0x1] %vm345_vm4, %v2986_v0 }
  0x77   : > { %387 = vst.msk [vmem:[#allocation2 + $0x17d] sm:$0x1] %vm345_vm4, %v2986_v0 }
  0x78   : > { %388 = vst.msk [vmem:[#allocation2 + $0x19d] sm:$0x1] %vm345_vm4, %v2986_v0 }
  0x79   : > { %389 = vst.msk [vmem:[#allocation2 + $0x1bd] sm:$0x1] %vm345_vm4, %v2986_v0 }
  0x7a   : > { %390 = vst.msk [vmem:[#allocation2 + $0x1dd] sm:$0x1] %vm345_vm4, %v2986_v0 }
  0x7b   : > { %391 = vst.msk [vmem:[#allocation2 + $0x1fd] sm:$0x1] %vm345_vm4, %v2986_v0 }
  0x7c   : > { %392 = vst.msk [vmem:[#allocation2 + $0x21d] sm:$0x1] %vm345_vm4, %v2986_v0 }
  0x7d   : > { %393 = vst.msk [vmem:[#allocation2 + $0x23d] sm:$0x1] %vm345_vm4, %v2986_v0 }
  0x7e   : > { %394 = vst.msk [vmem:[#allocation2 + $0x25d] sm:$0x1] %vm345_vm4, %v2986_v0 }
  0x7f   : > { %395 = vst.msk [vmem:[#allocation2 + $0x27d] sm:$0x1] %vm345_vm4, %v2986_v0 }
  0x80   : > { %396 = vst.msk [vmem:[#allocation2 + $0x29d] sm:$0x1] %vm345_vm4, %v2986_v0 }
  0x81   : > { %397 = vst.msk [vmem:[#allocation2 + $0x2bd] sm:$0x1] %vm345_vm4, %v2986_v0 }
  0x82   : > { %398 = vst.msk [vmem:[#allocation2 + $0x2dd] sm:$0x1] %vm345_vm4, %v2986_v0 }
  0x83   : > { %399 = vst.msk [vmem:[#allocation2 + $0x2fd] sm:$0x1] %vm345_vm4, %v2986_v0 }
  0x84   : > { %400 = vst.msk [vmem:[#allocation2 + $0x31d] sm:$0x1] %vm345_vm4, %v2986_v0 }
  0x85   : > { %401 = vst.msk [vmem:[#allocation2 + $0x33d] sm:$0x1] %vm345_vm4, %v2986_v0 }
  0x86   : > { %402 = vst.msk [vmem:[#allocation2 + $0x35d] sm:$0x1] %vm345_vm4, %v2986_v0 }
  0x87   : > { %403 = vst.msk [vmem:[#allocation2 + $0x37d] sm:$0x1] %vm345_vm4, %v2986_v0 }
  0x88   : > { %404 = vst.msk [vmem:[#allocation2 + $0x39d] sm:$0x1] %vm345_vm4, %v2986_v0 }
  0x89   : > { %405 = vst.msk [vmem:[#allocation2 + $0x3bd] sm:$0x1] %vm345_vm4, %v2986_v0 }
  0x8a LB: >> { %v3313_v1 = vld [vmem:[%s3830_s1] ss:$0 sm:$0xff]  ;;  %v3318_v2 = vld [vmem:[%s3830_s1 + $0x1] ss:$0 sm:$0xff]  ;;  %v3323_v3 = vld [vmem:[%s3830_s1 + $0x2] ss:$0 sm:$0xff]  ;;  %s2972_s19 = sphi %s3305_s19, %s473_s19  }
  0x8b   : >> { %s2161_s26 = sshll.u32 %s2972_s19, 5  ;;  %v3334_v4 = vld [vmem:[%s3830_s1 + $0x3] ss:$0 sm:$0xff]  ;;  %v3346_v12 = vld [vmem:[%s3830_s1 + $0x4] ss:$0 sm:$0xff]  ;;  %vm632_vm9 = vcmask 257024  }
  0x8c   : >> { %s3329_s27 = scalar_lea.vmem %s3058_s15, %s2161_s26  ;;  %v3353_v16 = vld [vmem:[%s3830_s1 + $0x5] ss:$0 sm:$0xff]  ;;  %v3361_v21 = vld [vmem:[%s3830_s1 + $0x6] ss:$0 sm:$0xff]  ;;  %v3371_v28 = vld [vmem:[%s3830_s1 + $0x7] ss:$0 sm:$0xff] }
  0x8d   : >> { %v476_v5 = vld [vmem:[%s3329_s27] sm:$0xff]  ;;  %v477_v22 = vld [vmem:[%s3329_s27 + $0x8] sm:$0xff]  ;;  %v478_v40 = vld [vmem:[%s3329_s27 + $0x10] sm:$0xff]  ;;  %s2058_s25 = scalar_lea.vmem [#allocation2], %s2161_s26  ;;  %s473_s19 = sadd.s32 1, %s2972_s19  }
  0x8e   : >> { %v490_v6 = vld [vmem:[%s3329_s27 + $0x1] sm:$0xff]  ;;  %v482_v8 = vmul.f32 %v3313_v1, %v476_v5  ;;  %v491_v23 = vld [vmem:[%s3329_s27 + $0x9] sm:$0xff]  ;;  %v483_v29 = vmul.f32 %v3313_v1, %v477_v22  ;;  %v492_v41 = vld [vmem:[%s3329_s27 + $0x11] sm:$0xff]  ;;  %v484_v44 = vmul.f32 %v3313_v1, %v478_v40  ;;  %p470_p4 = scmp.ge.s32.totalorder %s473_s19, 28  }
  0x8f   : >> { %v504_v7 = vld [vmem:[%s3329_s27 + $0x2] sm:$0xff]  ;;  %v496_v9 = vmul.f32 %v3318_v2, %v490_v6  ;;  %v505_v24 = vld [vmem:[%s3329_s27 + $0xa] sm:$0xff]  ;;  %v497_v30 = vmul.f32 %v3318_v2, %v491_v23  ;;  %v506_v42 = vld [vmem:[%s3329_s27 + $0x12] sm:$0xff]  ;;  %v498_v45 = vmul.f32 %v3318_v2, %v492_v41  ;;  %s3444_s26 = smov (%p470_p4), 0  }
  0x90   : >> { %v510_v10 = vmul.f32 %v3323_v3, %v504_v7  ;;  %v2163_v11 = vld [vmem:[%s3329_s27 + $0x20] sm:$0xff]  ;;  %v2164_v31 = vld [vmem:[%s3329_s27 + $0x28] sm:$0xff]  ;;  %v511_v34 = vmul.f32 %v3323_v3, %v505_v24  ;;  %v512_v46 = vmul.f32 %v3323_v3, %v506_v42  ;;  %v2165_v47 = vld [vmem:[%s3329_s27 + $0x30] sm:$0xff] }
  0x91   : >> { %v2167_v13 = vld [vmem:[%s3329_s27 + $0x21] sm:$0xff]  ;;  %v500_v14 = vadd.f32 %v496_v9, %v482_v8  ;;  %v527_v15 = vmul.f32 %v3334_v4, %v2163_v11  ;;  %v2168_v35 = vld [vmem:[%s3329_s27 + $0x29] sm:$0xff]  ;;  %v501_v38 = vadd.f32 %v497_v30, %v483_v29  ;;  %v528_v39 = vmul.f32 %v3334_v4, %v2164_v31  ;;  %v2169_v53 = vld [vmem:[%s3329_s27 + $0x31] sm:$0xff] }
  0x92   : >> { %v2171_v17 = vld [vmem:[%s3329_s27 + $0x22] sm:$0xff]  ;;  %v541_v19 = vmul.f32 %v3346_v12, %v2167_v13  ;;  %v2172_v43 = vld [vmem:[%s3329_s27 + $0x2a] sm:$0xff]  ;;  %v542_v51 = vmul.f32 %v3346_v12, %v2168_v35  ;;  %v502_v55 = vadd.f32 %v498_v45, %v484_v44  ;;  %v529_v56 = vmul.f32 %v3334_v4, %v2165_v47  ;;  %v479_v57 = vld [vmem:[%s3329_s27 + $0x18] sm:$0xf] }
  0x93   : >> { %v514_v18 = vadd.f32 %v510_v10, %v500_v14  ;;  %v2176_v20 = vld [vmem:[%s3329_s27 + $0x40] sm:$0xff]  ;;  %v555_v26 = vmul.f32 %v3353_v16, %v2171_v17  ;;  %v3380_v33 = vld [vmem:[%s3830_s1 + $0x8] ss:$0 sm:$0xff]  ;;  %v515_v50 = vadd.f32 %v511_v34, %v501_v38  ;;  %v493_v58 = vld [vmem:[%s3329_s27 + $0x19] sm:$0xf]  ;;  %v556_v62 = vmul.f32 %v3353_v16, %v2172_v43 }
  0x94   : >> { %v2180_v27 = vld [vmem:[%s3329_s27 + $0x41] sm:$0xff]  ;;  %v572_v37 = vmul.f32 %v3361_v21, %v2176_v20  ;;  %v507_v59 = vld [vmem:[%s3329_s27 + $0x1a] sm:$0xf]  ;;  %v2173_v63 = vld [vmem:[%s3329_s27 + $0x32] sm:$0xff]  ;;  %v485_v0 = vmul.f32 %v3313_v1, %v479_v57  ;;  %v516_v7 = vadd.f32 %v512_v46, %v502_v55  ;;  %v543_v8 = vmul.f32 %v3346_v12, %v2169_v53 }
  0x95   : >> { %v531_v25 = vadd.f32 %v527_v15, %v514_v18  ;;  %v2184_v32 = vld [vmem:[%s3329_s27 + $0x42] sm:$0xff]  ;;  %v586_v49 = vmul.f32 %v3371_v28, %v2180_v27  ;;  %v532_v61 = vadd.f32 %v528_v39, %v515_v50  ;;  %v2166_v5 = vld [vmem:[%s3329_s27 + $0x38] sm:$0xf]  ;;  %v499_v9 = vmul.f32 %v3318_v2, %v493_v58  ;;  %v2942_v13 = vld [vmem:[%s3831_s2] ss:$0 sm:$0xff] }
  0x96   : >> { %v2177_v52 = vld [vmem:[%s3329_s27 + $0x48] sm:$0xff]  ;;  %v600_v54 = vmul.f32 %v3380_v33, %v2184_v32  ;;  %v513_v10 = vmul.f32 %v3323_v3, %v507_v59  ;;  %v2178_v1 = vld [vmem:[%s3329_s27 + $0x50] sm:$0xff]  ;;  %v2170_v17 = vld [vmem:[%s3329_s27 + $0x39] sm:$0xf]  ;;  %v557_v20 = vmul.f32 %v3353_v16, %v2173_v63  ;;  %v530_v3 = vmul.f32 %v3334_v4, %v2166_v5 }
  0x97   : >> { %v545_v36 = vadd.f32 %v541_v19, %v531_v25  ;;  %v2181_v6 = vld [vmem:[%s3329_s27 + $0x49] sm:$0xff]  ;;  %v546_v14 = vadd.f32 %v542_v51, %v532_v61  ;;  %v573_v15 = vmul.f32 %v3361_v21, %v2177_v52  ;;  %v533_v19 = vadd.f32 %v529_v56, %v516_v7  ;;  %v2182_v25 = vld [vmem:[%s3329_s27 + $0x51] sm:$0xff]  ;;  %v2183_v43 = vld [vmem:[%s3329_s27 + $0x59] sm:$0xf] }
  0x98   : >> { %v2185_v18 = vld [vmem:[%s3329_s27 + $0x4a] sm:$0xff]  ;;  %v503_v2 = vadd.f32 %v499_v9, %v485_v0  ;;  %v587_v24 = vmul.f32 %v3371_v28, %v2181_v6  ;;  %v574_v29 = vmul.f32 %v3361_v21, %v2178_v1  ;;  %v544_v31 = vmul.f32 %v3346_v12, %v2170_v17  ;;  %v2179_v4 = vld [vmem:[%s3329_s27 + $0x58] sm:$0xf] }
  0x99   : >> { %v559_v48 = vadd.f32 %v555_v26, %v545_v36  ;;  %v560_v23 = vadd.f32 %v556_v62, %v546_v14  ;;  %v2174_v26 = vld [vmem:[%s3329_s27 + $0x3a] sm:$0xf]  ;;  %v547_v27 = vadd.f32 %v543_v8, %v533_v19  ;;  %v601_v35 = vmul.f32 %v3380_v33, %v2185_v18  ;;  %v2186_v36 = vld [vmem:[%s3329_s27 + $0x52] sm:$0xff] }
  0x9a   : >> { %v517_v30 = vadd.f32 %v513_v10, %v503_v2  ;;  %v588_v38 = vmul.f32 %v3371_v28, %v2182_v25  ;;  %v558_v40 = vmul.f32 %v3353_v16, %v2174_v26  ;;  %v602_v12 = vmul.f32 %v3380_v33, %v2186_v36 }
  0x9b   : >> { %v576_v60 = vadd.f32 %v572_v37, %v559_v48  ;;  %v577_v34 = vadd.f32 %v573_v15, %v560_v23  ;;  %v561_v37 = vadd.f32 %v557_v20, %v547_v27  ;;  %v575_v46 = vmul.f32 %v3361_v21, %v2179_v4 }
  0x9c   : >> { %v534_v39 = vadd.f32 %v530_v3, %v517_v30  ;;  %v589_v16 = vmul.f32 %v3371_v28, %v2183_v43 }
  0x9d   : >> { %v590_v11 = vadd.f32 %v586_v49, %v576_v60  ;;  %v591_v42 = vadd.f32 %v587_v24, %v577_v34  ;;  %v578_v44 = vadd.f32 %v574_v29, %v561_v37  ;;  %v2187_v49 = vld [vmem:[%s3329_s27 + $0x5a] sm:$0xf] }
  0x9e   : >> { %v548_v45 = vadd.f32 %v544_v31, %v534_v39  ;;  %v603_v55 = vmul.f32 %v3380_v33, %v2187_v49 }
  0x9f   : >> { %v604_v22 = vadd.f32 %v600_v54, %v590_v11  ;;  %v605_v48 = vadd.f32 %v601_v35, %v591_v42  ;;  %v592_v50 = vadd.f32 %v588_v38, %v578_v44 }
  0xa0   : >> { %v562_v51 = vadd.f32 %v558_v40, %v548_v45 }
  0xa1   : >> { %v612_v32 = vadd.f32 %v2942_v13, %v604_v22  ;;  %v613_v52 = vadd.f32 %v2942_v13, %v605_v48  ;;  %v606_v53 = vadd.f32 %v602_v12, %v592_v50 }
  0xa2   : >> { %v579_v54 = vadd.f32 %v575_v46, %v562_v51 }
  0xa3   : >> { %vm616_vm5 = vcmp.gt.f32.partialorder %v612_v32, 0.0  ;;  %v620_v41 = vmul.f32 0.01, %v612_v32  ;;  %vm617_vm6 = vcmp.gt.f32.partialorder %v613_v52, 0.0  ;;  %v621_v56 = vmul.f32 0.01, %v613_v52 }
  0xa4   : >> { %v614_v57 = vadd.f32 %v2942_v13, %v606_v53  ;;  %v593_v21 = vadd.f32 %v589_v16, %v579_v54 }
  0xa5   : >> { %v624_v47 = vsel %vm616_vm5, %v612_v32, %v620_v41  ;;  %v625_v58 = vsel %vm617_vm6, %v613_v52, %v621_v56 }
  0xa6   : >> { %2189 = vst.msk [vmem:[%s2058_s25 + $0x21] sm:$0xff] %vm334_vm0, %v624_v47  ;;  %vm618_vm7 = vcmp.gt.f32.partialorder %v614_v57, 0.0  ;;  %v622_v59 = vmul.f32 0.01, %v614_v57  ;;  %v607_v60 = vadd.f32 %v603_v55, %v593_v21 }
  0xa7   : >> { %2190 = vst.msk [vmem:[%s2058_s25 + $0x29] sm:$0xff] %vm334_vm0, %v625_v58 }
  0xa8   : >> { %v626_v61 = vsel %vm618_vm7, %v614_v57, %v622_v59  ;;  %v615_v62 = vadd.f32 %v2942_v13, %v607_v60 }
  0xa9   : >> { %2191 = vst.msk [vmem:[%s2058_s25 + $0x31] sm:$0xff] %vm334_vm0, %v626_v61  ;;  %472 = sbr.rel (!%p470_p4) target bundleno = 138 (0x8a), region = 178 }
  0xaa   : >> { %vm619_vm8 = vcmp.gt.f32.partialorder %v615_v62, 0.0  ;;  %v623_v28 = vmul.f32 0.01, %v615_v62 }
  0xac   : >> { %v627_v63 = vsel %vm619_vm8, %v615_v62, %v623_v28 }
  0xad   : >> { %2192 = vst.msk [vmem:[%s2058_s25 + $0x39] sm:$0xf] %vm632_vm9, %v627_v63 }
  0xae LB: >> { %v2798_v33 = vld [vmem:[%s3832_s3 + $0x18] sm:$0xff]  ;;  %v2796_v0 = vld [vmem:[%s3832_s3 + $0x8] sm:$0xff]  ;;  %v2797_v7 = vld [vmem:[%s3832_s3 + $0x10] sm:$0xff]  ;;  %s2794_s20 = sshll.u32 %s2976_s26, 6  ;;  %s2329_s11 = sshll.u32 %s2976_s26, 4  ;;  %vm1026_vm12 = vcmask 521216   ;;  %s2976_s26 = sphi %s3444_s26, %s639_s26  }
  0xaf   : >> { %v2800_v5 = vld [vmem:[%s3832_s3 + $0x28] sm:$0xff]  ;;  %v2803_v6 = vld [vmem:[%s3832_s3 + $0x38] sm:$0xff]  ;;  %682 = vmatpush.bf16.msra.mxu0 %v2798_v33  ;;  %711 = vmatpush.bf16.msra.mxu1 %v2796_v0  ;;  %v2795_v8 = vld [vmem:[%s3832_s3] sm:$0xff]  ;;  %s3477_s28 = scalar_lea.vmem [#allocation2], %s2794_s20  ;;  %s2081_s12 = scalar_lea.vmem [#allocation3], %s2329_s11 }
  0xb0   : >> { %750 = vmatpush.bf16.msra.mxu2 %v2800_v5  ;;  %793 = vmatpush.bf16.msra.mxu3 %v2803_v6  ;;  %v2799_v9 = vld [vmem:[%s3832_s3 + $0x20] sm:$0xff]  ;;  %v2802_v10 = vld [vmem:[%s3832_s3 + $0x30] sm:$0xff]  ;;  %v2805_v11 = vld [vmem:[%s3832_s3 + $0x48] sm:$0xff]  ;;  %s639_s26 = sadd.s32 1, %s2976_s26  }
  0xb1   : >> { %v2810_v15 = vld [vmem:[%s3832_s3 + $0x68] sm:$0xff]  ;;  %v2812_v3 = vld [vmem:[%s3832_s3 + $0x78] sm:$0xff]  ;;  %v2804_v27 = vld [vmem:[%s3832_s3 + $0x40] sm:$0xff]  ;;  %p636_p5 = scmp.ge.s32.totalorder %s639_s26, 14  }
  0xb2   : >> { %v2807_v25 = vld [vmem:[%s3832_s3 + $0x58] sm:$0xff]  ;;  %v2809_v29 = vld [vmem:[%s3832_s3 + $0x60] sm:$0xff]  ;;  %v2814_v30 = vld [vmem:[%s3832_s3 + $0x88] sm:$0xff]  ;;  %s3541_s15 = smov (%p636_p5), 0  }
  0xb3   : >> { %683 = vmatpush.bf16.msra.mxu0 %v2797_v7  ;;  %712 = vmatpush.bf16.msra.mxu1 %v2795_v8  ;;  %v2811_v31 = vld [vmem:[%s3832_s3 + $0x70] sm:$0xff]  ;;  %v2813_v34 = vld [vmem:[%s3832_s3 + $0x80] sm:$0xff] }
  0xb4   : >> { %v2196_v13 = vld [vmem:[%s3477_s28 + $0x1] ss:$2 sm:$0xff]  ;;  %v2197_v14 = vld [vmem:[%s3477_s28 + $0x11] ss:$2 sm:$0x3f]  ;;  %751 = vmatpush.bf16.msra.mxu2 %v2799_v9  ;;  %794 = vmatpush.bf16.msra.mxu3 %v2802_v10 }
  0xb5   : >> { %v655_v1 = vpack.c.bf16 %v2197_v14, %v2196_v13  ;;  %v643_v17 = vld [vmem:[%s3477_s28] ss:$2 sm:$0xff]  ;;  %v2195_v18 = vld [vmem:[%s3477_s28 + $0x10] ss:$2 sm:$0x3f] }
  0xb6   : >> { %v646_v19 = vpack.c.bf16 %v2195_v18, %v643_v17  ;;  %v2220_v20 = vld [vmem:[%s3477_s28 + $0x2] ss:$2 sm:$0xff]  ;;  %v2221_v2 = vld [vmem:[%s3477_s28 + $0x12] ss:$2 sm:$0x3f] }
  0xb7   : >> { %v723_v22 = vpack.c.bf16 %v2221_v2, %v2220_v20  ;;  %v2237_v23 = vld [vmem:[%s3477_s28 + $0x20] ss:$2 sm:$0xff]  ;;  %v2238_v24 = vld [vmem:[%s3477_s28 + $0x30] ss:$2 sm:$0x3f]  ;;  %834 = vmatpush.bf16.msrb.mxu0 %v2805_v11  ;;  %875 = vmatpush.bf16.msrb.mxu1 %v2807_v25 }
  0xb8   : >> { %v766_v26 = vpack.c.bf16 %v2238_v24, %v2237_v23  ;;  %918 = vmatpush.bf16.msrb.mxu2 %v2810_v15  ;;  %2210 = vmatmul.msk.bf16.vlgmr.msra.gmra.mxu0 %vm334_vm0, %v655_v1  ;;  %v2806_v32 = vld [vmem:[%s3832_s3 + $0x50] sm:$0xff]  ;;  %v2252_v35 = vld [vmem:[%s3477_s28 + $0x21] ss:$2 sm:$0xff]  ;;  %v2284_v4 = vld [vmem:[%s3477_s28 + $0x40] ss:$2 sm:$0xff] }
  0xb9   : >> { %2219 = vmatmul.msk.bf16.vlgmr.msra.gmra.mxu1 %vm334_vm0, %v646_v19  ;;  %2234 = vmatmul.msk.bf16.vlgmr.msra.gmra.mxu2 %vm334_vm0, %v723_v22  ;;  %v2253_v36 = vld [vmem:[%s3477_s28 + $0x31] ss:$2 sm:$0x3f]  ;;  %v2285_v37 = vld [vmem:[%s3477_s28 + $0x50] ss:$2 sm:$0x3f] }
  0xba   : >> { %2251 = vmatmul.msk.bf16.vlgmr.msra.gmra.mxu3 %vm334_vm0, %v766_v26  ;;  %v2267_v38 = vld [vmem:[%s3477_s28 + $0x22] ss:$2 sm:$0xff]  ;;  %v2268_v39 = vld [vmem:[%s3477_s28 + $0x32] ss:$2 sm:$0x3f]  ;;  %v807_v42 = vpack.c.bf16 %v2253_v36, %v2252_v35  ;;  %v891_v44 = vpack.c.bf16 %v2285_v37, %v2284_v4 }
  0xbb   : >> { %959 = vmatpush.bf16.msrb.mxu3 %v2812_v3  ;;  %835 = vmatpush.bf16.msrb.mxu0 %v2804_v27  ;;  %v2299_v40 = vld [vmem:[%s3477_s28 + $0x41] ss:$2 sm:$0xff]  ;;  %v2300_v41 = vld [vmem:[%s3477_s28 + $0x51] ss:$2 sm:$0x3f]  ;;  %v848_v43 = vpack.c.bf16 %v2268_v39, %v2267_v38 }
  0xbc   : >> { %919 = vmatpush.bf16.msrb.mxu2 %v2809_v29  ;;  %876 = vmatpush.bf16.msrb.mxu1 %v2806_v32  ;;  %v932_v12 = vpack.c.bf16 %v2300_v41, %v2299_v40  ;;  %v2314_v45 = vld [vmem:[%s3477_s28 + $0x42] ss:$2 sm:$0xff]  ;;  %v2315_v46 = vld [vmem:[%s3477_s28 + $0x52] ss:$2 sm:$0x3f] }
  0xbd   : >> { %v973_v47 = vpack.c.bf16 %v2315_v46, %v2314_v45  ;;  %v2943_v9 = vld [vmem:[%s3833_s4] ss:$0 sm:$0xff] }
  0xbf   : >> { %1000 = vmatpush.bf16.msra.mxu0 %v2814_v30  ;;  %960 = vmatpush.bf16.msrb.mxu3 %v2811_v31 }
  0xc3   : >> { %1001 = vmatpush.bf16.msra.mxu0 %v2813_v34 }
  0xc8   : >> { %2266 = vmatmul.msk.bf16.vlgmr.msrb.gmra.mxu0 %vm334_vm0, %v807_v42 }
  0xc9   : >> { %2281 = vmatmul.msk.bf16.vlgmr.msrb.gmra.mxu1 %vm334_vm0, %v848_v43  ;;  %2298 = vmatmul.msk.bf16.vlgmr.msrb.gmra.mxu2 %vm334_vm0, %v891_v44 }
  0xca   : >> { %2313 = vmatmul.msk.bf16.vlgmr.msrb.gmra.mxu3 %vm334_vm0, %v932_v12 }
  0xd8   : >> { %2328 = vmatmul.msk.bf16.vlgmr.msra.gmra.mxu0 %vm334_vm0, %v973_v47 }
 0x135   : >> { %v685_v48 = vpop.f32.mrf.mxu0 }
 0x136   : >> { %v714_v49 = vpop.f32.mrf.mxu1 }
 0x137   : >> { %v715_v53 = vadd.f32 %v714_v49, %v685_v48 }
 0x13c   : >> { %v753_v50 = vpop.f32.mrf.mxu2 }
 0x13d   : >> { %v796_v51 = vpop.f32.mrf.mxu3  ;;  %v687_v16 = vpop.f32.mrf.mxu0  ;;  %v758_v54 = vadd.f32 %v753_v50, %v715_v53 }
 0x13e   : >> { %v716_v52 = vpop.f32.mrf.mxu1 }
 0x13f   : >> { %v801_v21 = vadd.f32 %v796_v51, %v758_v54  ;;  %v717_v59 = vadd.f32 %v716_v52, %v687_v16 }
 0x144   : >> { %v755_v55 = vpop.f32.mrf.mxu2 }
 0x145   : >> { %v837_v56 = vpop.f32.mrf.mxu0  ;;  %v798_v57 = vpop.f32.mrf.mxu3  ;;  %v759_v61 = vadd.f32 %v755_v55, %v717_v59 }
 0x146   : >> { %v878_v58 = vpop.f32.mrf.mxu1  ;;  %v842_v60 = vadd.f32 %v837_v56, %v801_v21 }
 0x147   : >> { %v802_v33 = vadd.f32 %v798_v57, %v759_v61 }
 0x148   : >> { %v883_v63 = vadd.f32 %v878_v58, %v842_v60 }
 0x14c   : >> { %v921_v62 = vpop.f32.mrf.mxu2 }
 0x14d   : >> { %v839_v28 = vpop.f32.mrf.mxu0  ;;  %v926_v0 = vadd.f32 %v921_v62, %v883_v63  ;;  %v962_v5 = vpop.f32.mrf.mxu3 }
 0x14e   : >> { %v843_v6 = vadd.f32 %v839_v28, %v802_v33  ;;  %v880_v7 = vpop.f32.mrf.mxu1 }
 0x14f   : >> { %v967_v8 = vadd.f32 %v962_v5, %v926_v0 }
 0x150   : >> { %v884_v13 = vadd.f32 %v880_v7, %v843_v6 }
 0x154   : >> { %v923_v10 = vpop.f32.mrf.mxu2 }
 0x155   : >> { %v1003_v11 = vpop.f32.mrf.mxu0  ;;  %v927_v15 = vadd.f32 %v923_v10, %v884_v13  ;;  %v964_v18 = vpop.f32.mrf.mxu3 }
 0x156   : >> { %v1008_v14 = vadd.f32 %v1003_v11, %v967_v8 }
 0x157   : >> { %v968_v19 = vadd.f32 %v964_v18, %v927_v15 }
 0x158   : >> { %v1014_v1 = vadd.f32 %v2943_v9, %v1008_v14 }
 0x15a   : >> { %vm1016_vm10 = vcmp.gt.f32.partialorder %v1014_v1, 0.0  ;;  %v1018_v17 = vmul.f32 0.01, %v1014_v1 }
 0x15c   : >> { %v1020_v20 = vsel %vm1016_vm10, %v1014_v1, %v1018_v17 }
 0x15d   : >> { %2330 = vst.msk [vmem:[%s2081_s12 + $0x11] sm:$0xff] %vm406_vm2, %v1020_v20  ;;  %v1005_v2 = vpop.f32.mrf.mxu0 }
 0x15e   : >> { %v1009_v3 = vadd.f32 %v1005_v2, %v968_v19 }
 0x160   : >> { %v1015_v22 = vadd.f32 %v2943_v9, %v1009_v3 }
 0x161   : > { %638 = sbr.rel (!%p636_p5) target bundleno = 174 (0xae), region = 189 }
 0x162   : >> { %vm1017_vm11 = vcmp.gt.f32.partialorder %v1015_v22, 0.0  ;;  %v1019_v23 = vmul.f32 0.01, %v1015_v22 }
 0x164   : >> { %v1021_v24 = vsel %vm1017_vm11, %v1015_v22, %v1019_v23 }
 0x165   : >> { %2331 = vst.msk [vmem:[%s2081_s12 + $0x19] sm:$0x3f] %vm1026_vm12, %v1021_v24 }
 0x166 LB: >> { %v2823_v25 = vld [vmem:[%s3834_s5 + $0x38] sm:$0xff]  ;;  %v2822_v30 = vld [vmem:[%s3834_s5 + $0x30] sm:$0xff]  ;;  %s2815_s11 = sshll.u32 %s2980_s15, 5  ;;  %v2821_v35 = vld [vmem:[%s3834_s5 + $0x28] sm:$0xff]  ;;  %s2563_s20 = sshll.u32 %s2980_s15, 4  ;;  %vm1525_vm14 = vcmask 522240   ;;  %s2980_s15 = sphi %s3541_s15, %s1033_s15  }
 0x167   : >> { %v2819_v26 = vld [vmem:[%s3834_s5 + $0x18] sm:$0xff]  ;;  %1090 = vmatpush.bf16.msra.mxu0 %v2823_v25  ;;  %v2818_v31 = vld [vmem:[%s3834_s5 + $0x10] sm:$0xff]  ;;  %v2817_v36 = vld [vmem:[%s3834_s5 + $0x8] sm:$0xff]  ;;  %s3595_s10 = scalar_lea.vmem [#allocation3], %s2815_s11  ;;  %s2098_s26 = scalar_lea.vmem [#allocation4], %s2563_s20 }
 0x168   : >> { %v2827_v27 = vld [vmem:[%s3834_s5 + $0x58] sm:$0xff]  ;;  %1130 = vmatpush.bf16.msra.mxu1 %v2819_v26  ;;  %v2826_v32 = vld [vmem:[%s3834_s5 + $0x50] sm:$0xff]  ;;  %v2825_v4 = vld [vmem:[%s3834_s5 + $0x48] sm:$0xff]  ;;  %s1033_s15 = sadd.s32 1, %s2980_s15  }
 0x169   : >> { %v2832_v29 = vld [vmem:[%s3834_s5 + $0x78] sm:$0xff]  ;;  %1182 = vmatpush.bf16.msra.mxu2 %v2827_v27  ;;  %v2831_v34 = vld [vmem:[%s3834_s5 + $0x70] sm:$0xff]  ;;  %v2830_v37 = vld [vmem:[%s3834_s5 + $0x68] sm:$0xff]  ;;  %p1030_p6 = scmp.ge.s32.totalorder %s1033_s15, 7  }
 0x16a   : >> { %1237 = vmatpush.bf16.msra.mxu3 %v2832_v29  ;;  %v2820_v38 = vld [vmem:[%s3834_s5 + $0x20] sm:$0xff]  ;;  %v2836_v45 = vld [vmem:[%s3834_s5 + $0x98] sm:$0xff]  ;;  %v2835_v52 = vld [vmem:[%s3834_s5 + $0x90] sm:$0xff]  ;;  %s3683_s21 = smov (%p1030_p6), 0  }
 0x16b   : >> { %1091 = vmatpush.bf16.msra.mxu0 %v2822_v30  ;;  %v2816_v39 = vld [vmem:[%s3834_s5] sm:$0xff]  ;;  %v2845_v46 = vld [vmem:[%s3834_s5 + $0xd8] sm:$0xff]  ;;  %v2844_v53 = vld [vmem:[%s3834_s5 + $0xd0] sm:$0xff] }
 0x16c   : >> { %1131 = vmatpush.bf16.msra.mxu1 %v2818_v31  ;;  %v2824_v40 = vld [vmem:[%s3834_s5 + $0x40] sm:$0xff]  ;;  %v2405_v12 = vld [vmem:[%s3595_s10 + $0x10] ss:$2 sm:$0x7f]  ;;  %v2834_v56 = vld [vmem:[%s3834_s5 + $0x88] sm:$0xff] }
 0x16d   : >> { %1183 = vmatpush.bf16.msra.mxu2 %v2826_v32  ;;  %v2829_v41 = vld [vmem:[%s3834_s5 + $0x60] sm:$0xff]  ;;  %v1196_v50 = vpack.c.bf16 %v2405_v12, %v2405_v12  ;;  %v2849_v51 = vld [vmem:[%s3834_s5 + $0xf8] sm:$0xff]  ;;  %v2848_v54 = vld [vmem:[%s3834_s5 + $0xf0] sm:$0xff] }
 0x16e   : >> { %1238 = vmatpush.bf16.msra.mxu3 %v2831_v34  ;;  %v2334_v42 = vld [vmem:[%s3595_s10 + $0x1] ss:$2 sm:$0x7f]  ;;  %v1037_v43 = vld [vmem:[%s3595_s10] ss:$2 sm:$0x7f] }
 0x16f   : >> { %1092 = vmatpush.bf16.msra.mxu0 %v2821_v35  ;;  %v2377_v44 = vld [vmem:[%s3595_s10 + $0x2] ss:$2 sm:$0x7f]  ;;  %v1049_v47 = vpack.c.bf16 %v2334_v42, %v2334_v42  ;;  %v1038_v48 = vpack.c.bf16 %v1037_v43, %v1037_v43  ;;  %v2840_v16 = vld [vmem:[%s3834_s5 + $0xb8] sm:$0xff]  ;;  %v2839_v55 = vld [vmem:[%s3834_s5 + $0xb0] sm:$0xff] }
 0x170   : >> { %1132 = vmatpush.bf16.msra.mxu1 %v2817_v36  ;;  %v1141_v49 = vpack.c.bf16 %v2377_v44, %v2377_v44  ;;  %v2843_v57 = vld [vmem:[%s3834_s5 + $0xc8] sm:$0xff]  ;;  %v2833_v59 = vld [vmem:[%s3834_s5 + $0x80] sm:$0xff]  ;;  %v2853_v61 = vld [vmem:[%s3834_s5 + $0x118] sm:$0xff] }
 0x171   : >> { %1184 = vmatpush.bf16.msra.mxu2 %v2825_v4  ;;  %v2847_v21 = vld [vmem:[%s3834_s5 + $0xe8] sm:$0xff]  ;;  %v2842_v60 = vld [vmem:[%s3834_s5 + $0xc0] sm:$0xff]  ;;  %v2431_v63 = vld [vmem:[%s3595_s10 + $0x11] ss:$2 sm:$0x7f] }
 0x172   : >> { %1239 = vmatpush.bf16.msra.mxu3 %v2830_v37  ;;  %v2838_v58 = vld [vmem:[%s3834_s5 + $0xa8] sm:$0xff]  ;;  %v2846_v62 = vld [vmem:[%s3834_s5 + $0xe0] sm:$0xff]  ;;  %v2457_v5 = vld [vmem:[%s3595_s10 + $0x12] ss:$2 sm:$0x7f]  ;;  %v1249_v6 = vpack.c.bf16 %v2431_v63, %v2431_v63 }
 0x173   : >> { %1093 = vmatpush.bf16.msra.mxu0 %v2820_v38  ;;  %v2837_v28 = vld [vmem:[%s3834_s5 + $0xa0] sm:$0xff]  ;;  %v1302_v9 = vpack.c.bf16 %v2457_v5, %v2457_v5  ;;  %v2852_v10 = vld [vmem:[%s3834_s5 + $0x110] sm:$0xff]  ;;  %v2851_v11 = vld [vmem:[%s3834_s5 + $0x108] sm:$0xff] }
 0x174   : >> { %1133 = vmatpush.bf16.msra.mxu1 %v2816_v39  ;;  %v2485_v33 = vld [vmem:[%s3595_s10 + $0x20] ss:$2 sm:$0x7f]  ;;  %v2511_v0 = vld [vmem:[%s3595_s10 + $0x21] ss:$2 sm:$0x7f] }
 0x175   : >> { %1185 = vmatpush.bf16.msra.mxu2 %v2824_v40  ;;  %v1357_v7 = vpack.c.bf16 %v2485_v33, %v2485_v33  ;;  %v1410_v8 = vpack.c.bf16 %v2511_v0, %v2511_v0  ;;  %v2850_v13 = vld [vmem:[%s3834_s5 + $0x100] sm:$0xff] }
 0x176   : >> { %1240 = vmatpush.bf16.msra.mxu3 %v2829_v41  ;;  %2359 = vmatmul.msk.bf16.vlgmr.msra.gmra.mxu0 %vm406_vm2, %v1049_v47  ;;  %v2537_v14 = vld [vmem:[%s3595_s10 + $0x22] ss:$2 sm:$0x7f]  ;;  %v2944_v39 = vld [vmem:[%s3835_s6] ss:$0 sm:$0xff] }
 0x177   : >> { %1290 = vmatpush.bf16.msrb.mxu0 %v2836_v45  ;;  %2376 = vmatmul.msk.bf16.vlgmr.msra.gmra.mxu1 %vm406_vm2, %v1038_v48  ;;  %v1463_v15 = vpack.c.bf16 %v2537_v14, %v2537_v14 }
 0x178   : >> { %2402 = vmatmul.msk.bf16.vlgmr.msra.gmra.mxu2 %vm406_vm2, %v1141_v49  ;;  %1343 = vmatpush.bf16.msrb.mxu1 %v2840_v16 }
 0x179   : >> { %1398 = vmatpush.bf16.msrb.mxu2 %v2845_v46  ;;  %2430 = vmatmul.msk.bf16.vlgmr.msra.gmra.mxu3 %vm406_vm2, %v1196_v50 }
 0x17a   : >> { %1451 = vmatpush.bf16.msrb.mxu3 %v2849_v51 }
 0x17b   : >> { %1291 = vmatpush.bf16.msrb.mxu0 %v2835_v52 }
 0x17c   : >> { %1344 = vmatpush.bf16.msrb.mxu1 %v2839_v55 }
 0x17d   : >> { %1399 = vmatpush.bf16.msrb.mxu2 %v2844_v53 }
 0x17e   : >> { %1452 = vmatpush.bf16.msrb.mxu3 %v2848_v54 }
 0x17f   : >> { %1292 = vmatpush.bf16.msrb.mxu0 %v2834_v56 }
 0x180   : >> { %1345 = vmatpush.bf16.msrb.mxu1 %v2838_v58 }
 0x181   : >> { %1400 = vmatpush.bf16.msrb.mxu2 %v2843_v57 }
 0x182   : >> { %1453 = vmatpush.bf16.msrb.mxu3 %v2847_v21 }
 0x183   : >> { %1293 = vmatpush.bf16.msrb.mxu0 %v2833_v59 }
 0x184   : >> { %1346 = vmatpush.bf16.msrb.mxu1 %v2837_v28 }
 0x185   : >> { %1401 = vmatpush.bf16.msrb.mxu2 %v2842_v60 }
 0x186   : >> { %1454 = vmatpush.bf16.msrb.mxu3 %v2846_v62  ;;  %2456 = vmatmul.msk.bf16.vlgmr.msrb.gmra.mxu0 %vm406_vm2, %v1249_v6 }
 0x187   : >> { %1504 = vmatpush.bf16.msra.mxu0 %v2853_v61  ;;  %2482 = vmatmul.msk.bf16.vlgmr.msrb.gmra.mxu1 %vm406_vm2, %v1302_v9 }
 0x188   : >> { %2510 = vmatmul.msk.bf16.vlgmr.msrb.gmra.mxu2 %vm406_vm2, %v1357_v7 }
 0x189   : >> { %2536 = vmatmul.msk.bf16.vlgmr.msrb.gmra.mxu3 %vm406_vm2, %v1410_v8 }
 0x18b   : >> { %1505 = vmatpush.bf16.msra.mxu0 %v2852_v10 }
 0x18f   : >> { %1506 = vmatpush.bf16.msra.mxu0 %v2851_v11 }
 0x193   : >> { %1507 = vmatpush.bf16.msra.mxu0 %v2850_v13 }
 0x196   : >> { %2562 = vmatmul.msk.bf16.vlgmr.msra.gmra.mxu0 %vm406_vm2, %v1463_v15 }
 0x1f3   : >> { %v1095_v1 = vpop.f32.mrf.mxu0 }
 0x1f4   : >> { %v1135_v17 = vpop.f32.mrf.mxu1 }
 0x1f5   : >> { %v1136_v3 = vadd.f32 %v1135_v17, %v1095_v1 }
 0x1fb   : >> { %v1187_v18 = vpop.f32.mrf.mxu2  ;;  %v1097_v20 = vpop.f32.mrf.mxu0 }
 0x1fc   : >> { %v1242_v19 = vpop.f32.mrf.mxu3  ;;  %v1137_v2 = vpop.f32.mrf.mxu1  ;;  %v1191_v22 = vadd.f32 %v1187_v18, %v1136_v3 }
 0x1fe   : >> { %v1246_v27 = vadd.f32 %v1242_v19, %v1191_v22 }
 0x203   : >> { %v1189_v23 = vpop.f32.mrf.mxu2  ;;  %v1295_v25 = vpop.f32.mrf.mxu0 }
 0x204   : >> { %v1244_v24 = vpop.f32.mrf.mxu3  ;;  %v1348_v26 = vpop.f32.mrf.mxu1  ;;  %v1299_v29 = vadd.f32 %v1295_v25, %v1246_v27 }
 0x206   : >> { %v1352_v34 = vadd.f32 %v1348_v26, %v1299_v29 }
 0x20b   : >> { %v1403_v30 = vpop.f32.mrf.mxu2  ;;  %v1297_v32 = vpop.f32.mrf.mxu0 }
 0x20c   : >> { %v1456_v31 = vpop.f32.mrf.mxu3  ;;  %v1350_v35 = vpop.f32.mrf.mxu1  ;;  %v1407_v36 = vadd.f32 %v1403_v30, %v1352_v34 }
 0x20e   : >> { %v1460_v4 = vadd.f32 %v1456_v31, %v1407_v36 }
 0x213   : >> { %v1405_v37 = vpop.f32.mrf.mxu2  ;;  %v1509_v40 = vpop.f32.mrf.mxu0 }
 0x214   : >> { %v1458_v38 = vpop.f32.mrf.mxu3  ;;  %v1513_v41 = vadd.f32 %v1509_v40, %v1460_v4 }
 0x216   : >> { %v1518_v42 = vadd.f32 %v2944_v39, %v1513_v41 }
 0x217   : > { %1032 = sbr.rel (!%p1030_p6) target bundleno = 358 (0x166), region = 200 }
 0x218   : >> { %vm1519_vm13 = vcmp.gt.f32.partialorder %v1518_v42, 0.0  ;;  %v1520_v43 = vmul.f32 0.01, %v1518_v42 }
 0x21a   : >> { %v1521_v44 = vsel %vm1519_vm13, %v1518_v42, %v1520_v43 }
 0x21b   : >> { %2564 = vst.msk [vmem:[%s2098_s26 + $0x11] sm:$0x7f] %vm1525_vm14, %v1521_v44  ;;  %v1511_v12 = vpop.f32.mrf.mxu0 }
 0x21c LB: >> { %v2861_v45 = vld [vmem:[%s3836_s7 + $0x38] sm:$0xff]  ;;  %v2860_v49 = vld [vmem:[%s3836_s7 + $0x30] sm:$0xff]  ;;  %s2565_s20 = sshll.u32 %s2984_s21, 4  ;;  %v2859_v52 = vld [vmem:[%s3836_s7 + $0x28] sm:$0xff]  ;;  %s2791_s29 = sshll.u32 %s2984_s21, 3  ;;  %s2984_s21 = sphi %s3683_s21, %s1532_s21  }
 0x21d   : >> { %v2857_v46 = vld [vmem:[%s3836_s7 + $0x18] sm:$0xff]  ;;  %1587 = vmatpush.bf16.msra.mxu0 %v2861_v45  ;;  %v2856_v50 = vld [vmem:[%s3836_s7 + $0x10] sm:$0xff]  ;;  %v2855_v53 = vld [vmem:[%s3836_s7 + $0x8] sm:$0xff]  ;;  %s3734_s16 = scalar_lea.vmem [#allocation4], %s2565_s20  ;;  %s2015_s15 = scalar_lea.vmem %s3065_s18, %s2791_s29 }
 0x21e   : >> { %v2865_v47 = vld [vmem:[%s3836_s7 + $0x58] sm:$0xff]  ;;  %1627 = vmatpush.bf16.msra.mxu1 %v2857_v46  ;;  %v2864_v51 = vld [vmem:[%s3836_s7 + $0x50] sm:$0xff]  ;;  %v2863_v54 = vld [vmem:[%s3836_s7 + $0x48] sm:$0xff]  ;;  %s1532_s21 = sadd.s32 1, %s2984_s21  }
 0x21f   : >> { %v2869_v48 = vld [vmem:[%s3836_s7 + $0x78] sm:$0xff]  ;;  %1678 = vmatpush.bf16.msra.mxu2 %v2865_v47  ;;  %v2868_v16 = vld [vmem:[%s3836_s7 + $0x70] sm:$0xff]  ;;  %v2867_v55 = vld [vmem:[%s3836_s7 + $0x68] sm:$0xff]  ;;  %p1529_p7 = scmp.ge.s32.totalorder %s1532_s21, 7  }
 0x220   : >> { %1733 = vmatpush.bf16.msra.mxu3 %v2869_v48  ;;  %v2858_v56 = vld [vmem:[%s3836_s7 + $0x20] sm:$0xff]  ;;  %v2873_v28 = vld [vmem:[%s3836_s7 + $0x98] sm:$0xff]  ;;  %v2872_v9 = vld [vmem:[%s3836_s7 + $0x90] sm:$0xff] }
 0x221   : >> { %1588 = vmatpush.bf16.msra.mxu0 %v2860_v49  ;;  %v2854_v57 = vld [vmem:[%s3836_s7] sm:$0xff]  ;;  %v2881_v63 = vld [vmem:[%s3836_s7 + $0xd8] sm:$0xff]  ;;  %v2880_v10 = vld [vmem:[%s3836_s7 + $0xd0] sm:$0xff] }
 0x222   : >> { %1628 = vmatpush.bf16.msra.mxu1 %v2856_v50  ;;  %v2862_v21 = vld [vmem:[%s3836_s7 + $0x40] sm:$0xff]  ;;  %v2634_v62 = vld [vmem:[%s3734_s16 + $0x10] sm:$0x7f]  ;;  %v2885_v7 = vld [vmem:[%s3836_s7 + $0xf8] sm:$0xff] }
 0x223   : >> { %1679 = vmatpush.bf16.msra.mxu2 %v2864_v51  ;;  %v1545_v58 = vld [vmem:[%s3734_s16 + $0x1] sm:$0x7f]  ;;  %v1692_v6 = vpack.c.bf16 %v2634_v62, %v2634_v62  ;;  %v2877_v8 = vld [vmem:[%s3836_s7 + $0xb8] sm:$0xff]  ;;  %v2884_v11 = vld [vmem:[%s3836_s7 + $0xf0] sm:$0xff] }
 0x224   : >> { %1734 = vmatpush.bf16.msra.mxu3 %v2868_v16  ;;  %v1535_v59 = vld [vmem:[%s3734_s16] sm:$0x7f]  ;;  %v1546_v33 = vpack.c.bf16 %v1545_v58, %v1545_v58  ;;  %v2876_v13 = vld [vmem:[%s3836_s7 + $0xb0] sm:$0xff]  ;;  %v2871_v14 = vld [vmem:[%s3836_s7 + $0x88] sm:$0xff] }
 0x225   : >> { %1589 = vmatpush.bf16.msra.mxu0 %v2859_v52  ;;  %v2866_v60 = vld [vmem:[%s3836_s7 + $0x60] sm:$0xff]  ;;  %v1536_v0 = vpack.c.bf16 %v1535_v59, %v1535_v59  ;;  %v2879_v15 = vld [vmem:[%s3836_s7 + $0xc8] sm:$0xff]  ;;  %v2889_v20 = vld [vmem:[%s3836_s7 + $0x118] sm:$0xff] }
 0x226   : >> { %1629 = vmatpush.bf16.msra.mxu1 %v2855_v53  ;;  %v1636_v61 = vld [vmem:[%s3734_s16 + $0x2] sm:$0x7f]  ;;  %v2660_v3 = vld [vmem:[%s3734_s16 + $0x11] sm:$0x7f] }
 0x227   : >> { %1680 = vmatpush.bf16.msra.mxu2 %v2863_v54  ;;  %v1637_v5 = vpack.c.bf16 %v1636_v61, %v1636_v61  ;;  %v2883_v1 = vld [vmem:[%s3836_s7 + $0xe8] sm:$0xff]  ;;  %v2870_v18 = vld [vmem:[%s3836_s7 + $0x80] sm:$0xff]  ;;  %v2686_v25 = vld [vmem:[%s3734_s16 + $0x12] sm:$0x7f]  ;;  %v1744_v26 = vpack.c.bf16 %v2660_v3, %v2660_v3 }
 0x228   : >> { %1735 = vmatpush.bf16.msra.mxu3 %v2867_v55  ;;  %v2875_v17 = vld [vmem:[%s3836_s7 + $0xa8] sm:$0xff]  ;;  %v2878_v19 = vld [vmem:[%s3836_s7 + $0xc0] sm:$0xff]  ;;  %v1796_v30 = vpack.c.bf16 %v2686_v25, %v2686_v25  ;;  %v2888_v31 = vld [vmem:[%s3836_s7 + $0x110] sm:$0xff] }
 0x229   : >> { %1590 = vmatpush.bf16.msra.mxu0 %v2858_v56  ;;  %v2882_v2 = vld [vmem:[%s3836_s7 + $0xe0] sm:$0xff]  ;;  %v2887_v32 = vld [vmem:[%s3836_s7 + $0x108] sm:$0xff] }
 0x22a   : >> { %1630 = vmatpush.bf16.msra.mxu1 %v2854_v57  ;;  %v2874_v22 = vld [vmem:[%s3836_s7 + $0xa0] sm:$0xff] }
 0x22b   : >> { %1681 = vmatpush.bf16.msra.mxu2 %v2862_v21  ;;  %v2713_v23 = vld [vmem:[%s3734_s16 + $0x20] sm:$0x7f] }
 0x22c   : >> { %1736 = vmatpush.bf16.msra.mxu3 %v2866_v60  ;;  %2590 = vmatmul.msk.bf16.vlgmr.msra.gmra.mxu0 %vm406_vm2, %v1546_v33  ;;  %v2739_v24 = vld [vmem:[%s3734_s16 + $0x21] sm:$0x7f]  ;;  %v1851_v27 = vpack.c.bf16 %v2713_v23, %v2713_v23  ;;  %v2945_v57 = vld [vmem:[%s3837_s8] ss:$0 sm:$0xff] }
 0x22d   : >> { %1785 = vmatpush.bf16.msrb.mxu0 %v2873_v28  ;;  %2607 = vmatmul.msk.bf16.vlgmr.msra.gmra.mxu1 %vm406_vm2, %v1536_v0  ;;  %v1903_v29 = vpack.c.bf16 %v2739_v24, %v2739_v24  ;;  %v2886_v34 = vld [vmem:[%s3836_s7 + $0x100] sm:$0xff] }
 0x22e   : >> { %2632 = vmatmul.msk.bf16.vlgmr.msra.gmra.mxu2 %vm406_vm2, %v1637_v5  ;;  %1837 = vmatpush.bf16.msrb.mxu1 %v2877_v8  ;;  %v2765_v35 = vld [vmem:[%s3734_s16 + $0x22] sm:$0x7f] }
 0x22f   : >> { %1892 = vmatpush.bf16.msrb.mxu2 %v2881_v63  ;;  %2659 = vmatmul.msk.bf16.vlgmr.msra.gmra.mxu3 %vm406_vm2, %v1692_v6  ;;  %v1955_v36 = vpack.c.bf16 %v2765_v35, %v2765_v35 }
 0x230   : >> { %1944 = vmatpush.bf16.msrb.mxu3 %v2885_v7 }
 0x231   : >> { %1786 = vmatpush.bf16.msrb.mxu0 %v2872_v9 }
 0x232   : >> { %1838 = vmatpush.bf16.msrb.mxu1 %v2876_v13 }
 0x233   : >> { %1893 = vmatpush.bf16.msrb.mxu2 %v2880_v10 }
 0x234   : >> { %1945 = vmatpush.bf16.msrb.mxu3 %v2884_v11 }
 0x235   : >> { %1787 = vmatpush.bf16.msrb.mxu0 %v2871_v14 }
 0x236   : >> { %1839 = vmatpush.bf16.msrb.mxu1 %v2875_v17 }
 0x237   : >> { %1894 = vmatpush.bf16.msrb.mxu2 %v2879_v15 }
 0x238   : >> { %1946 = vmatpush.bf16.msrb.mxu3 %v2883_v1 }
 0x239   : >> { %1788 = vmatpush.bf16.msrb.mxu0 %v2870_v18 }
 0x23a   : >> { %1840 = vmatpush.bf16.msrb.mxu1 %v2874_v22 }
 0x23b   : >> { %1895 = vmatpush.bf16.msrb.mxu2 %v2878_v19 }
 0x23c   : >> { %1947 = vmatpush.bf16.msrb.mxu3 %v2882_v2  ;;  %2685 = vmatmul.msk.bf16.vlgmr.msrb.gmra.mxu0 %vm406_vm2, %v1744_v26 }
 0x23d   : >> { %1996 = vmatpush.bf16.msra.mxu0 %v2889_v20  ;;  %2711 = vmatmul.msk.bf16.vlgmr.msrb.gmra.mxu1 %vm406_vm2, %v1796_v30 }
 0x23e   : >> { %2738 = vmatmul.msk.bf16.vlgmr.msrb.gmra.mxu2 %vm406_vm2, %v1851_v27 }
 0x23f   : >> { %2764 = vmatmul.msk.bf16.vlgmr.msrb.gmra.mxu3 %vm406_vm2, %v1903_v29 }
 0x241   : >> { %1997 = vmatpush.bf16.msra.mxu0 %v2888_v31 }
 0x245   : >> { %1998 = vmatpush.bf16.msra.mxu0 %v2887_v32 }
 0x249   : >> { %1999 = vmatpush.bf16.msra.mxu0 %v2886_v34 }
 0x24c   : >> { %2790 = vmatmul.msk.bf16.vlgmr.msra.gmra.mxu0 %vm406_vm2, %v1955_v36 }
 0x2a9   : >> { %v1592_v4 = vpop.f32.mrf.mxu0 }
 0x2aa   : >> { %v1632_v37 = vpop.f32.mrf.mxu1 }
 0x2ab   : >> { %v1633_v42 = vadd.f32 %v1632_v37, %v1592_v4 }
 0x2b1   : >> { %v1683_v38 = vpop.f32.mrf.mxu2  ;;  %v1594_v40 = vpop.f32.mrf.mxu0 }
 0x2b2   : >> { %v1738_v39 = vpop.f32.mrf.mxu3  ;;  %v1634_v41 = vpop.f32.mrf.mxu1  ;;  %v1687_v43 = vadd.f32 %v1683_v38, %v1633_v42 }
 0x2b4   : >> { %v1742_v47 = vadd.f32 %v1738_v39, %v1687_v43 }
 0x2b9   : >> { %v1685_v44 = vpop.f32.mrf.mxu2  ;;  %v1790_v45 = vpop.f32.mrf.mxu0 }
 0x2ba   : >> { %v1740_v12 = vpop.f32.mrf.mxu3  ;;  %v1842_v46 = vpop.f32.mrf.mxu1  ;;  %v1794_v48 = vadd.f32 %v1790_v45, %v1742_v47 }
 0x2bc   : >> { %v1846_v16 = vadd.f32 %v1842_v46, %v1794_v48 }
 0x2c1   : >> { %v1897_v49 = vpop.f32.mrf.mxu2  ;;  %v1792_v51 = vpop.f32.mrf.mxu0 }
 0x2c2   : >> { %v1949_v50 = vpop.f32.mrf.mxu3  ;;  %v1844_v52 = vpop.f32.mrf.mxu1  ;;  %v1901_v53 = vadd.f32 %v1897_v49, %v1846_v16 }
 0x2c4   : >> { %v1953_v54 = vadd.f32 %v1949_v50, %v1901_v53 }
 0x2c9   : >> { %v1899_v55 = vpop.f32.mrf.mxu2  ;;  %v2001_v21 = vpop.f32.mrf.mxu0 }
 0x2ca   : >> { %v1951_v56 = vpop.f32.mrf.mxu3  ;;  %v2005_v58 = vadd.f32 %v2001_v21, %v1953_v54 }
 0x2cc   : >> { %v2010_v59 = vadd.f32 %v2945_v57, %v2005_v58 }
 0x2cd   : > { %1531 = sbr.rel (!%p1529_p7) target bundleno = 540 (0x21c), region = 211 }
 0x2ce   : >> { %vm2011_vm15 = vcmp.gt.f32.partialorder %v2010_v59, 0.0  ;;  %v2012_v60 = vmul.f32 0.01, %v2010_v59 }
 0x2d0   : >> { %v2013_v61 = vsel %vm2011_vm15, %v2010_v59, %v2012_v60 }
 0x2d1   : >> { %2017 = vst.msk [vmem:[%s2015_s15] sm:$0x7f] %vm1525_vm14, %v2013_v61  ;;  %v2003_v62 = vpop.f32.mrf.mxu0 }
 0x2d2 PF: > { %s19_s30 = sadd.s32 1, %s2968_s30  }
 0x2d3   : > { %p16_p8 = scmp.ge.s32.totalorder %s19_s30, 4  }
 0x2d5   :  { %18 = sbr.rel (!%p16_p8) target bundleno = 1 (0x1), region = 222 }

</bundles_post_ra>
